<compile_context>
chip_gen: v6e
topology: v6e:2x2x1
jax: 0.10.0
libtpu: 0.0.40
codegen_flags: <defaults>
</compile_context>

<pallas_src>
import jax
import jax.numpy as jnp
import numpy as np
from jax import lax
from jax.experimental import pallas as pl
from jax.experimental.pallas import tpu as pltpu


# ---------------------------------------------------------------------------
# Fused Pallas kernel
# ---------------------------------------------------------------------------

def _make_qkv_kernel(K, C, Fr, T, Bblk):
    Cin = K * C
    Cin2 = 2 * Cin            # real + imag input channels
    FrT = Fr * T
    N = Bblk * FrT            # folded lane width
    KROWS = 9 * Cin2 + 8      # 9 taps + bias/ones row + zero pad rows (8-aligned)
    HI = jax.lax.Precision.HIGHEST
    f32 = jnp.float32
    bf16 = jnp.bfloat16

    def kernel(q_ref, k_ref, expq_ref, selkey_ref, expk_ref,
               sel_lt_ref, sel_tl_ref, mask_ref, w_ref, o_ref, patches_ref):
        qcv = q_ref[0]                                       # (2C, N)  f32
        kcv = k_ref[0]                                       # (Cin2, N) f32

        # ----- attention score, derived from the single conv-layout copy of k -----
        qm = jnp.sqrt(qcv[:C] * qcv[:C] + qcv[C:] * qcv[C:])            # (C, N)
        km = jnp.sqrt(kcv[:Cin] * kcv[:Cin] + kcv[Cin:] * kcv[Cin:])    # (Cin, N)
        qm_rep = jnp.dot(expq_ref[...], qm,
                         preferred_element_type=f32, precision=HI)       # (Cin, N)
        keyrow = jnp.dot(selkey_ref[...], km * qm_rep,
                         preferred_element_type=f32, precision=HI)       # (K, N)
        logits = jnp.dot(keyrow, sel_lt_ref[...],
                         preferred_element_type=f32, precision=HI)       # (K, Bblk*T)

        m = jnp.max(logits, axis=0, keepdims=True)
        e = jnp.exp(logits - m)
        p = e / jnp.sum(e, axis=0, keepdims=True)                        # (K, Bblk*T)

        # ----- broadcast softmax back to per-(channel, pixel) scale -----
        p_lanes = jnp.dot(p, sel_tl_ref[...],
                          preferred_element_type=f32, precision=HI)      # (K, N)
        scale = jnp.dot(expk_ref[...], p_lanes,
                        preferred_element_type=f32, precision=HI)        # (Cin2, N)
        x2 = kcv * scale                                                 # (Cin2, N)

        # ----- im2col: 9 lane-rolled + masked copies streamed into bf16 scratch -----
        masks = mask_ref[...]                                            # (9, N)
        for dy in range(3):
            for dx in range(3):
                tap = dy * 3 + dx
                off = (dy - 1) * T + (dx - 1)
                if off == 0:
                    piece = x2
                else:
                    piece = pltpu.roll(x2, (-off) % N, axis=1) * masks[tap:tap + 1, :]
                patches_ref[pl.ds(tap * Cin2, Cin2), :] = piece.astype(bf16)

        # constant-1 row (folds the bias) + zero rows so the contraction dim is 8-aligned
        tail = (lax.broadcasted_iota(jnp.int32, (8, N), 0) == 0).astype(bf16)
        patches_ref[pl.ds(9 * Cin2, 8), :] = tail

        # ----- single lane-dense conv matmul: (Cout2, KROWS) @ (KROWS, N) -----
        o_ref[0] = jnp.dot(w_ref[...], patches_ref[...],
                           preferred_element_type=f32)

    return kernel


# ---------------------------------------------------------------------------
# Batch-folding heuristic: 1 grid step on single-TC chips, >=2 on v7x
# ---------------------------------------------------------------------------

def _pick_batch_block(B, FrT):
    kind = ""
    try:
        kind = jax.devices()[0].device_kind.lower()
    except Exception:
        pass
    two_tc = ("v7" in kind) or ("7x" in kind)
    # cap folded lane width to keep VMEM / vreg pressure modest
    bblk = max(1, min(B, max(1, 2048 // max(FrT, 1))))
    while B % bblk:
        bblk -= 1
    if two_tc and B % 2 == 0:
        bblk = min(bblk, B // 2)
        while B % bblk:
            bblk -= 1
    return max(1, bblk)


# ---------------------------------------------------------------------------
# Wrapper
# ---------------------------------------------------------------------------

def qkv_forward(q, k, Wr, Wi, br, bi):
    B, C, Fr, T, _ = q.shape
    K = k.shape[1]
    Cin = K * C
    Cin2 = 2 * Cin
    Cout2 = 2 * C
    FrT = Fr * T
    f32 = jnp.float32
    bf16 = jnp.bfloat16

    Bblk = _pick_batch_block(B, FrT)
    Gb = B // Bblk
    N = Bblk * FrT
    BT = Bblk * T
    KROWS = 9 * Cin2 + 8

    q = q.astype(f32)
    k = k.astype(f32)

    # single conv-layout copy of k (and q): channel = part*Cin + key*C + c,
    # lane = local_batch*Fr*T + f*T + t
    q_cv = (q.reshape(Gb, Bblk, C, Fr, T, 2)
             .transpose(0, 5, 2, 1, 3, 4).reshape(Gb, 2 * C, N))
    k_cv = (k.reshape(Gb, Bblk, K, C, Fr, T, 2)
             .transpose(0, 6, 2, 3, 1, 4, 5).reshape(Gb, Cin2, N))

    # ---- compile-time constant selectors / masks (tiny, DMA'd once) ----
    lane = np.arange(N)
    b_idx = lane // FrT
    f_idx = (lane % FrT) // T
    t_idx = lane % T
    j = np.arange(BT)
    sel_lt = ((b_idx[:, None] == (j // T)[None, :]) &
              (t_idx[:, None] == (j % T)[None, :])).astype(np.float32)       # (N, BT)
    sel_tl = np.ascontiguousarray(sel_lt.T)                                  # (BT, N)
    expq = (np.arange(Cin)[:, None] % C == np.arange(C)[None, :]).astype(np.float32)
    selkey = (np.arange(Cin)[None, :] // C == np.arange(K)[:, None]).astype(np.float32)
    expk = (((np.arange(Cin2) % Cin) // C)[:, None] ==
            np.arange(K)[None, :]).astype(np.float32)
    rows = []
    for dy in range(3):
        for dx in range(3):
            oy, ox = dy - 1, dx - 1
            rows.append(((t_idx + ox >= 0) & (t_idx + ox < T) &
                         (f_idx + oy >= 0) & (f_idx + oy < Fr)).astype(np.float32))
    mask = np.stack(rows, axis=0)                                            # (9, N)

    sel_lt = jnp.asarray(sel_lt); sel_tl = jnp.asarray(sel_tl)
    expq = jnp.asarray(expq); selkey = jnp.asarray(selkey)
    expk = jnp.asarray(expk); mask = jnp.asarray(mask)

    # ---- pack ComplexConv2d as one real matmul weight; bias folded as a column ----
    Wr_t = jnp.transpose(Wr, (2, 3, 0, 1)).reshape(9, C, Cin)
    Wi_t = jnp.transpose(Wi, (2, 3, 0, 1)).reshape(9, C, Cin)
    top = jnp.concatenate([Wr_t, -Wi_t], axis=2)                 # real-out rows
    bot = jnp.concatenate([Wi_t, Wr_t], axis=2)                  # imag-out rows
    W2 = jnp.concatenate([top, bot], axis=1)                     # (9, Cout2, Cin2)
    Wfull = W2.transpose(1, 0, 2).reshape(Cout2, 9 * Cin2)
    b2 = jnp.concatenate([br - bi, br + bi])                     # (Cout2,)
    bias_cols = jnp.zeros((Cout2, 8), f32).at[:, 0].set(b2)
    Wext = jnp.concatenate([Wfull, bias_cols], axis=1).astype(bf16)   # (Cout2, KROWS)

    conv_flops = 2 * Cout2 * KROWS * N
    score_flops = 2 * N * (Cin * C + K * Cin + Cin2 * K) + 4 * K * BT * N
    cost = pl.CostEstimate(
        flops=int(Gb * (conv_flops + score_flops)),
        transcendentals=int(Gb * (K * BT + (C + Cin) * N)),
        bytes_accessed=int(q_cv.size * 4 + k_cv.size * 4 + Gb * Cout2 * N * 4 +
                           Wext.size * 2 +
                           (sel_lt.size + sel_tl.size + mask.size +
                            expq.size + selkey.size + expk.size) * 4),
    )

    out_flat = pl.pallas_call(
        _make_qkv_kernel(K, C, Fr, T, Bblk),
        out_shape=jax.ShapeDtypeStruct((Gb, Cout2, N), f32),
        grid=(Gb,),
        in_specs=[
            pl.BlockSpec((1, 2 * C, N), lambda g: (g, 0, 0)),     # q (conv layout)
            pl.BlockSpec((1, Cin2, N), lambda g: (g, 0, 0)),      # k (conv layout, single copy)
            pl.BlockSpec((Cin, C), lambda g: (0, 0)),             # expq  (|q| -> per-key rows)
            pl.BlockSpec((K, Cin), lambda g: (0, 0)),             # selkey (channel -> key reduce)
            pl.BlockSpec((Cin2, K), lambda g: (0, 0)),            # expk  (key -> conv channels)
            pl.BlockSpec((N, BT), lambda g: (0, 0)),              # lane -> (batch,t) reduce
            pl.BlockSpec((BT, N), lambda g: (0, 0)),              # (batch,t) -> lane broadcast
            pl.BlockSpec((9, N), lambda g: (0, 0)),               # tap validity masks
            pl.BlockSpec((Cout2, KROWS), lambda g: (0, 0)),       # packed conv weight (bf16)
        ],
        out_specs=pl.BlockSpec((1, Cout2, N), lambda g: (g, 0, 0)),
        scratch_shapes=[pltpu.VMEM((KROWS, N), bf16)],            # im2col patches
        compiler_params=pltpu.CompilerParams(
            dimension_semantics=("parallel",),
            vmem_limit_bytes=32 * 1024 * 1024),
        cost_estimate=cost,
    )(q_cv, k_cv, expq, selkey, expk, sel_lt, sel_tl, mask, Wext)

    # (Gb, Cout2, Bblk*Fr*T) -> (B, C, Fr, T, 2)
    out = out_flat.reshape(Gb, 2, C, Bblk, Fr, T).transpose(0, 3, 2, 4, 5, 1)
    return out.reshape(B, C, Fr, T, 2)


# ---------------------------------------------------------------------------
# Pure-JAX reference (mirrors the PyTorch forward, fp32 HIGHEST)
# ---------------------------------------------------------------------------

def qkv_reference(q, k, Wr, Wi, br, bi):
    B, C, Fr, T, _ = q.shape
    K = k.shape[1]
    qm = jnp.sqrt(q[..., 0] ** 2 + q[..., 1] ** 2).reshape(B, C * Fr, T)
    km = jnp.sqrt(k[..., 0] ** 2 + k[..., 1] ** 2).reshape(B, K, C * Fr, T)
    q_ = qm.transpose(0, 2, 1).reshape(B * T, C * Fr)
    k_ = km.transpose(0, 3, 1, 2).reshape(B * T, K, C * Fr)
    score = jnp.einsum('bkd,bd->bk', k_, q_,
                       precision=jax.lax.Precision.HIGHEST).reshape(B, T, K)
    score = jax.nn.softmax(score, axis=-1)
    score = score.transpose(0, 2, 1).reshape(B, K, 1, 1, T, 1)
    xw = (k * score).reshape(B, K * C, Fr, T, 2)

    def conv2d(x, W, b):
        y = jax.lax.conv_general_dilated(
            x, W, window_strides=(1, 1), padding=((1, 1), (1, 1)),
            dimension_numbers=('NCHW', 'OIHW', 'NCHW'),
            precision=jax.lax.Precision.HIGHEST)
        return y + b[None, :, None, None]

    real = conv2d(xw[..., 0], Wr, br) - conv2d(xw[..., 1], Wi, bi)
    imag = conv2d(xw[..., 1], Wr, br) + conv2d(xw[..., 0], Wi, bi)
    return jnp.stack([real, imag], axis=-1)


if __name__ == "__main__":
    B, K, C, Fr, T = 2, 3, 4, 16, 8
    key = jax.random.PRNGKey(0)
    kq, kk, kwr, kwi, kbr, kbi = jax.random.split(key, 6)
    q = jax.random.normal(kq, (B, C, Fr, T, 2), jnp.float32)
    k = jax.random.normal(kk, (B, K, C, Fr, T, 2), jnp.float32)
    Cin = K * C
    Wr = 0.1 * jax.random.normal(kwr, (C, Cin, 3, 3), jnp.float32)
    Wi = 0.1 * jax.random.normal(kwi, (C, Cin, 3, 3), jnp.float32)
    br = 0.1 * jax.random.normal(kbr, (C,), jnp.float32)
    bi = 0.1 * jax.random.normal(kbi, (C,), jnp.float32)

    out = jax.jit(qkv_forward)(q, k, Wr, Wi, br, bi)
    out = jax.block_until_ready(out)

    ref = qkv_reference(q, k, Wr, Wi, br, bi)
    assert out.shape == (B, C, Fr, T, 2)
    # tolerance accounts for the bf16-operand / f32-accumulate conv matmul
    np.testing.assert_allclose(np.asarray(out), np.asarray(ref),
                               rtol=2e-2, atol=1e-2)
    print("KERNEL_OK")
</pallas_src>

<mosaic_0001>
module attributes {stable_mosaic.version = 11 : i64} {
  func.func @kernel(%arg0: i32, %arg1: memref<1x8x256xf32, #tpu.memory_space<vmem>>, %arg2: memref<1x24x256xf32, #tpu.memory_space<vmem>>, %arg3: memref<12x4xf32, #tpu.memory_space<vmem>>, %arg4: memref<3x12xf32, #tpu.memory_space<vmem>>, %arg5: memref<24x3xf32, #tpu.memory_space<vmem>>, %arg6: memref<256x16xf32, #tpu.memory_space<vmem>>, %arg7: memref<16x256xf32, #tpu.memory_space<vmem>>, %arg8: memref<9x256xf32, #tpu.memory_space<vmem>>, %arg9: memref<8x224xbf16, #tpu.memory_space<vmem>>, %arg10: memref<1x8x256xf32, #tpu.memory_space<vmem>>, %arg11: memref<224x256xbf16, #tpu.memory_space<vmem>>) attributes {dimension_semantics = [#tpu.dimension_semantics<parallel>], iteration_bounds = array<i64: 1>, scalar_prefetch = 0 : i64, scratch_operands = 1 : i64, tpu.core_type = #tpu.core_type<tc>, window_params = [{transform_indices = @transform_0, window_bounds = array<i64: 1, 8, 256>}, {transform_indices = @transform_1, window_bounds = array<i64: 1, 24, 256>}, {pipeline_mode = #tpu.pipeline_mode<synchronous>, transform_indices = @transform_2, window_bounds = array<i64: 12, 4>}, {pipeline_mode = #tpu.pipeline_mode<synchronous>, transform_indices = @transform_3, window_bounds = array<i64: 3, 12>}, {pipeline_mode = #tpu.pipeline_mode<synchronous>, transform_indices = @transform_4, window_bounds = array<i64: 24, 3>}, {pipeline_mode = #tpu.pipeline_mode<synchronous>, transform_indices = @transform_5, window_bounds = array<i64: 256, 16>}, {pipeline_mode = #tpu.pipeline_mode<synchronous>, transform_indices = @transform_6, window_bounds = array<i64: 16, 256>}, {pipeline_mode = #tpu.pipeline_mode<synchronous>, transform_indices = @transform_7, window_bounds = array<i64: 9, 256>}, {pipeline_mode = #tpu.pipeline_mode<synchronous>, transform_indices = @transform_8, window_bounds = array<i64: 8, 224>}, {transform_indices = @transform_9, window_bounds = array<i64: 1, 8, 256>}]} {
    %c0 = arith.constant 0 : index
    %c0_0 = arith.constant 0 : index
    %c0_1 = arith.constant 0 : index
    %0 = vector.load %arg1[%c0, %c0_0, %c0_1] : memref<1x8x256xf32, #tpu.memory_space<vmem>>, vector<1x8x256xf32>
    %1 = vector.shape_cast %0 : vector<1x8x256xf32> to vector<8x256xf32>
    %c0_2 = arith.constant 0 : index
    %c0_3 = arith.constant 0 : index
    %c0_4 = arith.constant 0 : index
    %2 = vector.load %arg2[%c0_2, %c0_3, %c0_4] : memref<1x24x256xf32, #tpu.memory_space<vmem>>, vector<1x24x256xf32>
    %3 = vector.shape_cast %2 : vector<1x24x256xf32> to vector<24x256xf32>
    %4 = vector.extract_strided_slice %1 {offsets = [0, 0], sizes = [4, 256], strides = [1, 1]} : vector<8x256xf32> to vector<4x256xf32>
    %5 = vector.extract_strided_slice %1 {offsets = [0, 0], sizes = [4, 256], strides = [1, 1]} : vector<8x256xf32> to vector<4x256xf32>
    %6 = arith.mulf %4, %5 : vector<4x256xf32>
    %7 = vector.extract_strided_slice %1 {offsets = [4, 0], sizes = [4, 256], strides = [1, 1]} : vector<8x256xf32> to vector<4x256xf32>
    %8 = vector.extract_strided_slice %1 {offsets = [4, 0], sizes = [4, 256], strides = [1, 1]} : vector<8x256xf32> to vector<4x256xf32>
    %9 = arith.mulf %7, %8 : vector<4x256xf32>
    %10 = arith.addf %6, %9 : vector<4x256xf32>
    %11 = math.sqrt %10 : vector<4x256xf32>
    %12 = vector.extract_strided_slice %3 {offsets = [0, 0], sizes = [12, 256], strides = [1, 1]} : vector<24x256xf32> to vector<12x256xf32>
    %13 = vector.extract_strided_slice %3 {offsets = [0, 0], sizes = [12, 256], strides = [1, 1]} : vector<24x256xf32> to vector<12x256xf32>
    %14 = arith.mulf %12, %13 : vector<12x256xf32>
    %15 = vector.extract_strided_slice %3 {offsets = [12, 0], sizes = [12, 256], strides = [1, 1]} : vector<24x256xf32> to vector<12x256xf32>
    %16 = vector.extract_strided_slice %3 {offsets = [12, 0], sizes = [12, 256], strides = [1, 1]} : vector<24x256xf32> to vector<12x256xf32>
    %17 = arith.mulf %15, %16 : vector<12x256xf32>
    %18 = arith.addf %14, %17 : vector<12x256xf32>
    %19 = math.sqrt %18 : vector<12x256xf32>
    %c0_5 = arith.constant 0 : index
    %c0_6 = arith.constant 0 : index
    %20 = vector.load %arg3[%c0_5, %c0_6] : memref<12x4xf32, #tpu.memory_space<vmem>>, vector<12x4xf32>
    %cst = arith.constant dense<0.000000e+00> : vector<12x256xf32>
    %21 = tpu.matmul %20, %11, %cst {dimension_numbers = #tpu.dot_dimension_numbers<[1], [0], [0], [1], [0, 0, 1, 1], [], []>, precision = #tpu.contract_precision<fp32>} : vector<12x4xf32>, vector<4x256xf32>, vector<12x256xf32> -> vector<12x256xf32>
    %c0_7 = arith.constant 0 : index
    %c0_8 = arith.constant 0 : index
    %22 = vector.load %arg4[%c0_7, %c0_8] : memref<3x12xf32, #tpu.memory_space<vmem>>, vector<3x12xf32>
    %23 = arith.mulf %19, %21 : vector<12x256xf32>
    %cst_9 = arith.constant dense<0.000000e+00> : vector<3x256xf32>
    %24 = tpu.matmul %22, %23, %cst_9 {dimension_numbers = #tpu.dot_dimension_numbers<[1], [0], [0], [1], [0, 0, 1, 1], [], []>, precision = #tpu.contract_precision<fp32>} : vector<3x12xf32>, vector<12x256xf32>, vector<3x256xf32> -> vector<3x256xf32>
    %c0_10 = arith.constant 0 : index
    %c0_11 = arith.constant 0 : index
    %25 = vector.load %arg6[%c0_10, %c0_11] : memref<256x16xf32, #tpu.memory_space<vmem>>, vector<256x16xf32>
    %cst_12 = arith.constant dense<0.000000e+00> : vector<3x16xf32>
    %26 = tpu.matmul %24, %25, %cst_12 {dimension_numbers = #tpu.dot_dimension_numbers<[1], [0], [0], [1], [0, 0, 1, 1], [], []>, precision = #tpu.contract_precision<fp32>} : vector<3x256xf32>, vector<256x16xf32>, vector<3x16xf32> -> vector<3x16xf32>
    %cst_13 = arith.constant dense<0xFF800000> : vector<16xf32>
    %27 = vector.multi_reduction <maximumf>, %26, %cst_13 [0] : vector<3x16xf32> to vector<16xf32>
    %28 = vector.shape_cast %27 : vector<16xf32> to vector<1x16xf32>
    %29 = vector.broadcast %28 : vector<1x16xf32> to vector<3x16xf32>
    %30 = arith.subf %26, %29 : vector<3x16xf32>
    %31 = math.exp %30 : vector<3x16xf32>
    %cst_14 = arith.constant dense<0.000000e+00> : vector<16xf32>
    %32 = vector.multi_reduction <add>, %31, %cst_14 [0] : vector<3x16xf32> to vector<16xf32>
    %33 = vector.shape_cast %32 : vector<16xf32> to vector<1x16xf32>
    %34 = vector.broadcast %33 : vector<1x16xf32> to vector<3x16xf32>
    %35 = arith.divf %31, %34 : vector<3x16xf32>
    %c0_15 = arith.constant 0 : index
    %c0_16 = arith.constant 0 : index
    %36 = vector.load %arg7[%c0_15, %c0_16] : memref<16x256xf32, #tpu.memory_space<vmem>>, vector<16x256xf32>
    %cst_17 = arith.constant dense<0.000000e+00> : vector<3x256xf32>
    %37 = tpu.matmul %35, %36, %cst_17 {dimension_numbers = #tpu.dot_dimension_numbers<[1], [0], [0], [1], [0, 0, 1, 1], [], []>, precision = #tpu.contract_precision<fp32>} : vector<3x16xf32>, vector<16x256xf32>, vector<3x256xf32> -> vector<3x256xf32>
    %c0_18 = arith.constant 0 : index
    %c0_19 = arith.constant 0 : index
    %38 = vector.load %arg5[%c0_18, %c0_19] : memref<24x3xf32, #tpu.memory_space<vmem>>, vector<24x3xf32>
    %cst_20 = arith.constant dense<0.000000e+00> : vector<24x256xf32>
    %39 = tpu.matmul %38, %37, %cst_20 {dimension_numbers = #tpu.dot_dimension_numbers<[1], [0], [0], [1], [0, 0, 1, 1], [], []>, precision = #tpu.contract_precision<fp32>} : vector<24x3xf32>, vector<3x256xf32>, vector<24x256xf32> -> vector<24x256xf32>
    %40 = arith.mulf %3, %39 : vector<24x256xf32>
    %c0_21 = arith.constant 0 : index
    %c0_22 = arith.constant 0 : index
    %41 = vector.load %arg8[%c0_21, %c0_22] : memref<9x256xf32, #tpu.memory_space<vmem>>, vector<9x256xf32>
    %c9_i32 = arith.constant 9 : i32
    %42 = tpu.dynamic_rotate %40 by %c9_i32 dim 1 : vector<24x256xf32>, i32 -> vector<24x256xf32>
    %43 = vector.extract_strided_slice %41 {offsets = [0, 0], sizes = [1, 256], strides = [1, 1]} : vector<9x256xf32> to vector<1x256xf32>
    %44 = vector.broadcast %43 : vector<1x256xf32> to vector<24x256xf32>
    %45 = arith.mulf %42, %44 : vector<24x256xf32>
    %46 = arith.truncf %45 : vector<24x256xf32> to vector<24x256xbf16>
    %c0_23 = arith.constant 0 : index
    %c0_24 = arith.constant 0 : index
    %47 = vector.load %arg11[%c0_23, %c0_24] : memref<224x256xbf16, #tpu.memory_space<vmem>>, vector<24x256xbf16>
    tpu.vector_store %arg11[%c0_23, %c0_24], %46 {strides = array<i32>} : memref<224x256xbf16, #tpu.memory_space<vmem>>, vector<24x256xbf16>,
    %c8_i32 = arith.constant 8 : i32
    %48 = tpu.dynamic_rotate %40 by %c8_i32 dim 1 : vector<24x256xf32>, i32 -> vector<24x256xf32>
    %49 = vector.extract_strided_slice %41 {offsets = [1, 0], sizes = [1, 256], strides = [1, 1]} : vector<9x256xf32> to vector<1x256xf32>
    %50 = vector.broadcast %49 : vector<1x256xf32> to vector<24x256xf32>
    %51 = arith.mulf %48, %50 : vector<24x256xf32>
    %52 = arith.truncf %51 : vector<24x256xf32> to vector<24x256xbf16>
    %c24 = arith.constant 24 : index
    %c0_25 = arith.constant 0 : index
    %53 = vector.load %arg11[%c24, %c0_25] : memref<224x256xbf16, #tpu.memory_space<vmem>>, vector<24x256xbf16>
    tpu.vector_store %arg11[%c24, %c0_25], %52 {strides = array<i32>} : memref<224x256xbf16, #tpu.memory_space<vmem>>, vector<24x256xbf16>,
    %c7_i32 = arith.constant 7 : i32
    %54 = tpu.dynamic_rotate %40 by %c7_i32 dim 1 : vector<24x256xf32>, i32 -> vector<24x256xf32>
    %55 = vector.extract_strided_slice %41 {offsets = [2, 0], sizes = [1, 256], strides = [1, 1]} : vector<9x256xf32> to vector<1x256xf32>
    %56 = vector.broadcast %55 : vector<1x256xf32> to vector<24x256xf32>
    %57 = arith.mulf %54, %56 : vector<24x256xf32>
    %58 = arith.truncf %57 : vector<24x256xf32> to vector<24x256xbf16>
    %c48 = arith.constant 48 : index
    %c0_26 = arith.constant 0 : index
    %59 = vector.load %arg11[%c48, %c0_26] : memref<224x256xbf16, #tpu.memory_space<vmem>>, vector<24x256xbf16>
    tpu.vector_store %arg11[%c48, %c0_26], %58 {strides = array<i32>} : memref<224x256xbf16, #tpu.memory_space<vmem>>, vector<24x256xbf16>,
    %c1_i32 = arith.constant 1 : i32
    %60 = tpu.dynamic_rotate %40 by %c1_i32 dim 1 : vector<24x256xf32>, i32 -> vector<24x256xf32>
    %61 = vector.extract_strided_slice %41 {offsets = [3, 0], sizes = [1, 256], strides = [1, 1]} : vector<9x256xf32> to vector<1x256xf32>
    %62 = vector.broadcast %61 : vector<1x256xf32> to vector<24x256xf32>
    %63 = arith.mulf %60, %62 : vector<24x256xf32>
    %64 = arith.truncf %63 : vector<24x256xf32> to vector<24x256xbf16>
    %c72 = arith.constant 72 : index
    %c0_27 = arith.constant 0 : index
    %65 = vector.load %arg11[%c72, %c0_27] : memref<224x256xbf16, #tpu.memory_space<vmem>>, vector<24x256xbf16>
    tpu.vector_store %arg11[%c72, %c0_27], %64 {strides = array<i32>} : memref<224x256xbf16, #tpu.memory_space<vmem>>, vector<24x256xbf16>,
    %66 = arith.truncf %40 : vector<24x256xf32> to vector<24x256xbf16>
    %c96 = arith.constant 96 : index
    %c0_28 = arith.constant 0 : index
    %67 = vector.load %arg11[%c96, %c0_28] : memref<224x256xbf16, #tpu.memory_space<vmem>>, vector<24x256xbf16>
    tpu.vector_store %arg11[%c96, %c0_28], %66 {strides = array<i32>} : memref<224x256xbf16, #tpu.memory_space<vmem>>, vector<24x256xbf16>,
    %c255_i32 = arith.constant 255 : i32
    %68 = tpu.dynamic_rotate %40 by %c255_i32 dim 1 : vector<24x256xf32>, i32 -> vector<24x256xf32>
    %69 = vector.extract_strided_slice %41 {offsets = [5, 0], sizes = [1, 256], strides = [1, 1]} : vector<9x256xf32> to vector<1x256xf32>
    %70 = vector.broadcast %69 : vector<1x256xf32> to vector<24x256xf32>
    %71 = arith.mulf %68, %70 : vector<24x256xf32>
    %72 = arith.truncf %71 : vector<24x256xf32> to vector<24x256xbf16>
    %c120 = arith.constant 120 : index
    %c0_29 = arith.constant 0 : index
    %73 = vector.load %arg11[%c120, %c0_29] : memref<224x256xbf16, #tpu.memory_space<vmem>>, vector<24x256xbf16>
    tpu.vector_store %arg11[%c120, %c0_29], %72 {strides = array<i32>} : memref<224x256xbf16, #tpu.memory_space<vmem>>, vector<24x256xbf16>,
    %c249_i32 = arith.constant 249 : i32
    %74 = tpu.dynamic_rotate %40 by %c249_i32 dim 1 : vector<24x256xf32>, i32 -> vector<24x256xf32>
    %75 = vector.extract_strided_slice %41 {offsets = [6, 0], sizes = [1, 256], strides = [1, 1]} : vector<9x256xf32> to vector<1x256xf32>
    %76 = vector.broadcast %75 : vector<1x256xf32> to vector<24x256xf32>
    %77 = arith.mulf %74, %76 : vector<24x256xf32>
    %78 = arith.truncf %77 : vector<24x256xf32> to vector<24x256xbf16>
    %c144 = arith.constant 144 : index
    %c0_30 = arith.constant 0 : index
    %79 = vector.load %arg11[%c144, %c0_30] : memref<224x256xbf16, #tpu.memory_space<vmem>>, vector<24x256xbf16>
    tpu.vector_store %arg11[%c144, %c0_30], %78 {strides = array<i32>} : memref<224x256xbf16, #tpu.memory_space<vmem>>, vector<24x256xbf16>,
    %c248_i32 = arith.constant 248 : i32
    %80 = tpu.dynamic_rotate %40 by %c248_i32 dim 1 : vector<24x256xf32>, i32 -> vector<24x256xf32>
    %81 = vector.extract_strided_slice %41 {offsets = [7, 0], sizes = [1, 256], strides = [1, 1]} : vector<9x256xf32> to vector<1x256xf32>
    %82 = vector.broadcast %81 : vector<1x256xf32> to vector<24x256xf32>
    %83 = arith.mulf %80, %82 : vector<24x256xf32>
    %84 = arith.truncf %83 : vector<24x256xf32> to vector<24x256xbf16>
    %c168 = arith.constant 168 : index
    %c0_31 = arith.constant 0 : index
    %85 = vector.load %arg11[%c168, %c0_31] : memref<224x256xbf16, #tpu.memory_space<vmem>>, vector<24x256xbf16>
    tpu.vector_store %arg11[%c168, %c0_31], %84 {strides = array<i32>} : memref<224x256xbf16, #tpu.memory_space<vmem>>, vector<24x256xbf16>,
    %c247_i32 = arith.constant 247 : i32
    %86 = tpu.dynamic_rotate %40 by %c247_i32 dim 1 : vector<24x256xf32>, i32 -> vector<24x256xf32>
    %87 = vector.extract_strided_slice %41 {offsets = [8, 0], sizes = [1, 256], strides = [1, 1]} : vector<9x256xf32> to vector<1x256xf32>
    %88 = vector.broadcast %87 : vector<1x256xf32> to vector<24x256xf32>
    %89 = arith.mulf %86, %88 : vector<24x256xf32>
    %90 = arith.truncf %89 : vector<24x256xf32> to vector<24x256xbf16>
    %c192 = arith.constant 192 : index
    %c0_32 = arith.constant 0 : index
    %91 = vector.load %arg11[%c192, %c0_32] : memref<224x256xbf16, #tpu.memory_space<vmem>>, vector<24x256xbf16>
    tpu.vector_store %arg11[%c192, %c0_32], %90 {strides = array<i32>} : memref<224x256xbf16, #tpu.memory_space<vmem>>, vector<24x256xbf16>,
    %92 = tpu.iota {dimensions = array<i32: 0>} : vector<8x256xi32>
    %c0_i32 = arith.constant 0 : i32
    %93 = vector.broadcast %c0_i32 : i32 to vector<8x256xi32>
    %94 = arith.cmpi eq, %92, %93 : vector<8x256xi32>
    %95 = arith.extui %94 : vector<8x256xi1> to vector<8x256xi32>
    %96 = arith.sitofp %95 : vector<8x256xi32> to vector<8x256xf32>
    %97 = arith.truncf %96 : vector<8x256xf32> to vector<8x256xbf16>
    %c216 = arith.constant 216 : index
    %c0_33 = arith.constant 0 : index
    %98 = vector.load %arg11[%c216, %c0_33] : memref<224x256xbf16, #tpu.memory_space<vmem>>, vector<8x256xbf16>
    tpu.vector_store %arg11[%c216, %c0_33], %97 {strides = array<i32>} : memref<224x256xbf16, #tpu.memory_space<vmem>>, vector<8x256xbf16>,
    %c0_34 = arith.constant 0 : index
    %c0_35 = arith.constant 0 : index
    %99 = vector.load %arg9[%c0_34, %c0_35] : memref<8x224xbf16, #tpu.memory_space<vmem>>, vector<8x224xbf16>
    %c0_36 = arith.constant 0 : index
    %c0_37 = arith.constant 0 : index
    %100 = vector.load %arg11[%c0_36, %c0_37] : memref<224x256xbf16, #tpu.memory_space<vmem>>, vector<224x256xbf16>
    %cst_38 = arith.constant dense<0.000000e+00> : vector<8x256xf32>
    %101 = tpu.matmul %99, %100, %cst_38 {dimension_numbers = #tpu.dot_dimension_numbers<[1], [0], [0], [1], [0, 0, 1, 1], [], []>} : vector<8x224xbf16>, vector<224x256xbf16>, vector<8x256xf32> -> vector<8x256xf32>
    %c0_39 = arith.constant 0 : index
    %c0_40 = arith.constant 0 : index
    %c0_41 = arith.constant 0 : index
    %102 = vector.load %arg10[%c0_39, %c0_40, %c0_41] : memref<1x8x256xf32, #tpu.memory_space<vmem>>, vector<1x8x256xf32>
    %103 = vector.shape_cast %102 : vector<1x8x256xf32> to vector<8x256xf32>
    %104 = vector.shape_cast %101 : vector<8x256xf32> to vector<1x8x256xf32>
    tpu.vector_store %arg10[%c0_39, %c0_40, %c0_41], %104 {strides = array<i32>} : memref<1x8x256xf32, #tpu.memory_space<vmem>>, vector<1x8x256xf32>,
    return
  }
  func.func @transform_0(%arg0: i32) -> (i32, i32, i32) {
    %c0_i32 = arith.constant 0 : i32
    %c0_i32_0 = arith.constant 0 : i32
    %c0_i32_1 = arith.constant 0 : i32
    return %arg0, %c0_i32, %c0_i32_0 : i32, i32, i32
  }
  func.func @transform_1(%arg0: i32) -> (i32, i32, i32) {
    %c0_i32 = arith.constant 0 : i32
    %c0_i32_0 = arith.constant 0 : i32
    %c0_i32_1 = arith.constant 0 : i32
    return %arg0, %c0_i32, %c0_i32_0 : i32, i32, i32
  }
  func.func @transform_2(%arg0: i32) -> (i32, i32) {
    %c0_i32 = arith.constant 0 : i32
    %c0_i32_0 = arith.constant 0 : i32
    %c0_i32_1 = arith.constant 0 : i32
    return %c0_i32, %c0_i32_0 : i32, i32
  }
  func.func @transform_3(%arg0: i32) -> (i32, i32) {
    %c0_i32 = arith.constant 0 : i32
    %c0_i32_0 = arith.constant 0 : i32
    %c0_i32_1 = arith.constant 0 : i32
    return %c0_i32, %c0_i32_0 : i32, i32
  }
  func.func @transform_4(%arg0: i32) -> (i32, i32) {
    %c0_i32 = arith.constant 0 : i32
    %c0_i32_0 = arith.constant 0 : i32
    %c0_i32_1 = arith.constant 0 : i32
    return %c0_i32, %c0_i32_0 : i32, i32
  }
  func.func @transform_5(%arg0: i32) -> (i32, i32) {
    %c0_i32 = arith.constant 0 : i32
    %c0_i32_0 = arith.constant 0 : i32
    %c0_i32_1 = arith.constant 0 : i32
    return %c0_i32, %c0_i32_0 : i32, i32
  }
  func.func @transform_6(%arg0: i32) -> (i32, i32) {
    %c0_i32 = arith.constant 0 : i32
    %c0_i32_0 = arith.constant 0 : i32
    %c0_i32_1 = arith.constant 0 : i32
    return %c0_i32, %c0_i32_0 : i32, i32
  }
  func.func @transform_7(%arg0: i32) -> (i32, i32) {
    %c0_i32 = arith.constant 0 : i32
    %c0_i32_0 = arith.constant 0 : i32
    %c0_i32_1 = arith.constant 0 : i32
    return %c0_i32, %c0_i32_0 : i32, i32
  }
  func.func @transform_8(%arg0: i32) -> (i32, i32) {
    %c0_i32 = arith.constant 0 : i32
    %c0_i32_0 = arith.constant 0 : i32
    %c0_i32_1 = arith.constant 0 : i32
    return %c0_i32, %c0_i32_0 : i32, i32
  }
  func.func @transform_9(%arg0: i32) -> (i32, i32, i32) {
    %c0_i32 = arith.constant 0 : i32
    %c0_i32_0 = arith.constant 0 : i32
    %c0_i32_1 = arith.constant 0 : i32
    return %arg0, %c0_i32, %c0_i32_0 : i32, i32, i32
  }
}

</mosaic_0001>

<bundles_post_ra>
// kernel: qkv_forward.1
= control target key start
LH: loop header
LB: loop body
LE: loop exit
PB: predicated region body
PF: predicated region fallthrough
CT: control target
= control target key end

     0   :  { %v5430_v2 = vmov 0.0   ;;  %vm120_vm0 = vcmask 31744   ;;  %vm75_vm2 = vcmask 1043456   ;;  %vm652_vm7 = vcmask 97280   ;;  %s4233_s14 = smov 127   ;;  %s4235_s15 = smov 8   ;;  %s5420_s0 = inlined_call_operand.vmem [shape: f32[1,8,256], index: 0, kind: input, shape index: {}]   ;;  %s5421_s2 = inlined_call_operand.vmem [shape: f32[12,4], index: 2, kind: input, shape index: {}]   ;;  %s5422_s1 = inlined_call_operand.vmem [shape: f32[1,24,256], index: 1, kind: input, shape index: {}]   ;;  %s5423_s3 = inlined_call_operand.vmem [shape: f32[3,12], index: 3, kind: input, shape index: {}]   ;;  %s5424_s5 = inlined_call_operand.vmem [shape: f32[256,16], index: 5, kind: input, shape index: {}]   ;;  %s5425_s6 = inlined_call_operand.vmem [shape: f32[16,256], index: 6, kind: input, shape index: {}]   ;;  %s5426_s4 = inlined_call_operand.vmem [shape: f32[24,3], index: 4, kind: input, shape index: {}]   ;;  %s5427_s8 = inlined_call_operand.vmem [shape: bf16[8,224], index: 8, kind: input, shape index: {}]   ;;  %s5428_s7 = inlined_call_operand.vmem [shape: f32[9,256], index: 7, kind: input, shape index: {}]   ;;  %s5429_s9 = inlined_call_operand.vmem [shape: f32[1,8,256], index: 9, kind: output, shape index: {}]  }
   0x1   :  { %v34_v0 = vld [vmem:[%s5420_s0 + $0x8] sm:$0xff]  ;;  %v33_v1 = vld [vmem:[%s5420_s0] sm:$0xff]  ;;  %199 = vmatprep.mubr.f32.mxu0 %v5430_v2  ;;  %462 = vmatprep.mubr.f32.mxu1 %v5430_v2  ;;  %v37_v45 = vld [vmem:[%s5422_s1 + $0x10] sm:$0xff]  ;;  %vm2047_vm15 = vcmask 124928   ;;  %s4234_s0 = smov 1   ;;  %s4236_s17 = smov 7  }
   0x2   :  { %v42_v3 = vmul.f32 %v34_v0, %v34_v0  ;;  %v41_v4 = vmul.f32 %v33_v1, %v33_v1  ;;  %v118_v7 = vld [vmem:[%s5421_s2] sm:$0xff]  ;;  %v119_v11 = vld [vmem:[%s5421_s2 + $0x8] sm:$0xf]  ;;  %v38_v47 = vld [vmem:[%s5422_s1 + $0x18] sm:$0xff]  ;;  %v67_v49 = vmul.f32 %v37_v45, %v37_v45  ;;  %s4237_s18 = smov 9   ;;  %s4238_s19 = smov 119  }
   0x3   :  { %v122_v10 = vsel %vm120_vm0, %v118_v7, 0  ;;  %v125_v13 = vsel %vm120_vm0, %v119_v11, 0  ;;  %v39_v46 = vld [vmem:[%s5422_s1 + $0x20] sm:$0xff]  ;;  %v40_v48 = vld [vmem:[%s5422_s1 + $0x28] sm:$0xff]  ;;  %v68_v51 = vmul.f32 %v38_v47, %v38_v47  ;;  %vm2071_vm0 = vcmask 130048   ;;  %s4239_s23 = smov 120  }
   0x4   :  { %v46_v5 = vrot.slane %v42_v3, 4  ;;  %v45_v6 = vrot.slane %v41_v4, 4  ;;  %v4306_v12 = vand.u32 4294901760, %v122_v10  ;;  %v4309_v15 = vand.u32 4294901760, %v125_v13  ;;  %v35_v53 = vld [vmem:[%s5422_s1] sm:$0xff]  ;;  %v36_v56 = vld [vmem:[%s5422_s1 + $0x8] sm:$0xff] }
   0x5   :  { %v69_v50 = vmul.f32 %v39_v46, %v39_v46  ;;  %v70_v52 = vmul.f32 %v40_v48, %v40_v48  ;;  %v76_v54 = vrot.slane %v67_v49, 4  ;;  %v79_v57 = vrot.slane %v68_v51, 4 }
   0x6   :  { %v50_v8 = vadd.f32 %v46_v5, %v42_v3  ;;  %v49_v9 = vadd.f32 %v45_v6, %v41_v4  ;;  %v201_v14 = vsub.f32 %v122_v10, %v4306_v12  ;;  %v212_v17 = vsub.f32 %v125_v13, %v4309_v15 }
   0x7   :  { %v77_v55 = vrot.slane %v69_v50, 4  ;;  %v80_v58 = vrot.slane %v70_v52, 4  ;;  %v65_v59 = vmul.f32 %v35_v53, %v35_v53  ;;  %v66_v61 = vmul.f32 %v36_v56, %v36_v56 }
   0x8   :  { %4210 = vrsqrt.f32 %v50_v8  ;;  %v202_v16 = vand.u32 4294901760, %v201_v14  ;;  %vm60_vm1 = vcmp.eq.f32.partialorder %v50_v8, inf  ;;  %v63_v19 = vand.u32 2147483648, %v50_v8 }
   0x9   :  { %4212 = vrsqrt.f32 %v49_v9  ;;  %vm62_vm3 = vcmp.eq.f32.partialorder %v50_v8, 0.0  ;;  %vm53_vm4 = vcmp.eq.f32.partialorder %v49_v9, inf  ;;  %v56_v22 = vand.u32 2147483648, %v49_v9 }
   0xa   :  { %vm55_vm5 = vcmp.eq.f32.partialorder %v49_v9, 0.0  ;;  %v203_v24 = vsub.f32 %v201_v14, %v202_v16  ;;  %v213_v25 = vand.u32 4294901760, %v212_v17  ;;  %v78_v60 = vsel %vm75_vm2, %v76_v54, %v77_v55 }
   0xb   :  { %v81_v62 = vsel %vm75_vm2, %v79_v57, %v80_v58  ;;  %v4352_v63 = vadd.f32 %v78_v60, %v65_v59  ;;  %v4358_v4 = vadd.f32 %v77_v55, %v67_v49  ;;  %v4360_v7 = vadd.f32 %v80_v58, %v68_v51 }
   0xc   :  { %v204_v33 = vand.u32 4294901760, %v203_v24  ;;  %v214_v34 = vsub.f32 %v212_v17, %v213_v25  ;;  %v4354_v0 = vadd.f32 %v81_v62, %v66_v61 }
   0xd   :  { %4214 = vrsqrt.f32 %v4352_v63  ;;  %vm92_vm6 = vcmp.eq.f32.partialorder %v4352_v63, inf  ;;  %vm94_vm9 = vcmp.eq.f32.partialorder %v4352_v63, 0.0  ;;  %vm106_vm11 = vcmp.eq.f32.partialorder %v4358_v4, inf }
   0xe   :  { %v215_v38 = vand.u32 4294901760, %v214_v34  ;;  %4216 = vrsqrt.f32 %v4354_v0  ;;  %vm99_vm8 = vcmp.eq.f32.partialorder %v4354_v0, inf  ;;  %vm101_vm10 = vcmp.eq.f32.partialorder %v4354_v0, 0.0 }
   0xf   :  { %4218 = vrsqrt.f32 %v4358_v4  ;;  %vm113_vm12 = vcmp.eq.f32.partialorder %v4360_v7, inf  ;;  %v109_v53 = vand.u32 2147483648, %v4358_v4  ;;  %vm108_vm13 = vcmp.eq.f32.partialorder %v4358_v4, 0.0 }
  0x10   :  { %4220 = vrsqrt.f32 %v4360_v7  ;;  %vm115_vm14 = vcmp.eq.f32.partialorder %v4360_v7, 0.0  ;;  %v116_v60 = vand.u32 2147483648, %v4360_v7 }
  0x15   :  { %v4211_v18 = vpop.eup %4210 }
  0x16   :  { %v4213_v20 = vpop.eup %4212  ;;  %v59_v21 = vmul.f32 %v4211_v18, %v50_v8 }
  0x17   :  { %v52_v23 = vmul.f32 %v4213_v20, %v49_v9 }
  0x18   :  { %v61_v26 = vsel %vm60_vm1, %v50_v8, %v59_v21  ;;  %vm2569_vm1 = vcmask 23552  }
  0x19   :  { %v64_v27 = vsel %vm62_vm3, %v63_v19, %v61_v26  ;;  %v54_v28 = vsel %vm53_vm4, %v49_v9, %v52_v23  ;;  %v647_v23 = vld [vmem:[%s5423_s3] sm:$0x7]  ;;  %vm3823_vm3 = vcmask 785408  }
  0x1a   :  { %v131_v29 = vsel %vm75_vm2, %v64_v27, 0  ;;  %v57_v30 = vsel %vm55_vm5, %v56_v22, %v54_v28  ;;  %v654_v34 = vsel %vm652_vm7, %v647_v23, 0 }
  0x1b   :  { %v163_v31 = vand.u32 4294901760, %v131_v29  ;;  %v128_v32 = vsel %vm75_vm2, %v57_v30, 0  ;;  %v4380_v45 = vand.u32 4294901760, %v654_v34 }
  0x1c   :  { %v165_v35 = vand.u32 4294901760, %v128_v32 }
  0x1d   :  { %164 = vmatprep.subr.mxu0 %v163_v31  ;;  %v253_v36 = vsub.f32 %v131_v29, %v163_v31  ;;  %427 = vmatprep.subr.mxu1 %v163_v31  ;;  %v95_v29 = vand.u32 2147483648, %v4352_v63  ;;  %v4394_v61 = vsub.f32 %v654_v34, %v4380_v45  ;;  %v1184_v34 = vld [vmem:[%s5424_s5 + $0xf8] sm:$0xff] }
  0x1e   :  { %166 = vmatpush1.msra.mxu0 %v165_v35  ;;  %v259_v37 = vsub.f32 %v128_v32, %v165_v35  ;;  %429 = vmatpush1.msra.mxu1 %v165_v35 }
  0x1f   :  { %205 = vmatmul.mubr.f32.vlgmr.msra.gmra.mxu0 %v204_v33  ;;  %v254_v39 = vand.u32 4294901760, %v253_v36  ;;  %466 = vmatmul.mubr.f32.vlgmr.msra.gmra.mxu1 %v202_v16 }
  0x20   :  { %210 = vmatprep.mubr.f32.mxu0 %v5430_v2  ;;  %v260_v40 = vand.u32 4294901760, %v259_v37  ;;  %471 = vmatprep.mubr.f32.mxu1 %v5430_v2 }
  0x21   :  { %v255_v41 = vsub.f32 %v253_v36, %v254_v39  ;;  %597 = vmatprep.subr.mxu1 %v163_v31 }
  0x22   :  { %v261_v42 = vsub.f32 %v259_v37, %v260_v40  ;;  %599 = vmatpush1.msra.mxu1 %v165_v35 }
  0x23   :  { %216 = vmatmul.mubr.f32.gmra.mxu0 %v215_v38  ;;  %v256_v43 = vand.u32 4294901760, %v255_v41  ;;  %475 = vmatmul.mubr.f32.gmra.mxu1 %v213_v25 }
  0x24   :  { %v262_v44 = vand.u32 4294901760, %v261_v42  ;;  %296 = vmatprep.mubr.f32.mxu0 %v5430_v2  ;;  %632 = vmatprep.mubr.f32.mxu1 %v5430_v2 }
  0x25   :  { %257 = vmatprep.subr.mxu0 %v256_v43 }
  0x26   :  { %263 = vmatpush1.msra.mxu0 %v262_v44 }
  0x27   :  { %298 = vmatmul.mubr.f32.vlgmr.msra.gmra.mxu0 %v4306_v12  ;;  %343 = vmatprep.subr.mxu0 %v253_v36 }
  0x28   :  { %303 = vmatprep.mubr.f32.mxu0 %v5430_v2  ;;  %346 = vmatpush1.msra.mxu0 %v259_v37  ;;  %v102_v37 = vand.u32 2147483648, %v4354_v0 }
  0x29   :  { %514 = vmatprep.subr.mxu0 %v254_v39  ;;  %634 = vmatmul.mubr.f32.vlgmr.msra.gmra.mxu1 %v4306_v12 }
  0x2a   :  { %639 = vmatprep.mubr.f32.mxu1 %v5430_v2 }
  0x2b   :  { %305 = vmatmul.mubr.f32.gmra.mxu0 %v4309_v15 }
  0x2c   :  { %379 = vmatprep.mubr.f32.mxu0 %v5430_v2 }
  0x2d   :  { %641 = vmatmul.mubr.f32.gmra.mxu1 %v4309_v15 }
  0x2e   :  { %826 = vmatprep.mubr.f32.mxu1 %v5430_v2 }
  0x2f   :  { %382 = vmatmul.mubr.f32.vlgmr.msra.gmra.mxu0 %v201_v14  ;;  %v4215_v14 = vpop.eup %4214 }
  0x30   :  { %387 = vmatprep.mubr.f32.mxu0 %v5430_v2  ;;  %518 = vmatpush1.msra.mxu0 %v260_v40  ;;  %v4217_v16 = vpop.eup %4216  ;;  %v91_v19 = vmul.f32 %v4215_v14, %v4352_v63 }
  0x31   :  { %v98_v22 = vmul.f32 %v4217_v16, %v4354_v0  ;;  %v4219_v24 = vpop.eup %4218 }
  0x32   :  { %v93_v28 = vsel %vm92_vm6, %v4352_v63, %v91_v19  ;;  %v4221_v31 = vpop.eup %4220  ;;  %v105_v38 = vmul.f32 %v4219_v24, %v4358_v4 }
  0x33   :  { %390 = vmatmul.mubr.f32.gmra.mxu0 %v212_v17  ;;  %v100_v36 = vsel %vm99_vm8, %v4354_v0, %v98_v22  ;;  %v112_v44 = vmul.f32 %v4221_v31, %v4360_v7  ;;  %v96_v50 = vsel %vm94_vm9, %v95_v29, %v93_v28 }
  0x34   :  { %551 = vmatprep.mubr.f32.mxu0 %v5430_v2  ;;  %v103_v51 = vsel %vm101_vm10, %v102_v37, %v100_v36  ;;  %v107_v52 = vsel %vm106_vm11, %v4358_v4, %v105_v38  ;;  %v4422_v38 = vand.u32 4294901760, %v1184_v34 }
  0x35   :  { %v114_v59 = vsel %vm113_vm12, %v4360_v7, %v112_v44  ;;  %v1182_v44 = vld [vmem:[%s5424_s5 + $0xe8] sm:$0xff] }
  0x37   :  { %553 = vmatmul.mubr.f32.vlgmr.msra.gmra.mxu0 %v4306_v12 }
  0x38   :  { %558 = vmatprep.mubr.f32.mxu0 %v5430_v2 }
  0x3b   :  { %560 = vmatmul.mubr.f32.gmra.mxu0 %v4309_v15 }
  0x3c   :  { %730 = vmatprep.mubr.f32.mxu0 %v5430_v2 }
  0xdf   :  { %v206_v1 = vpop.f32.mrf.mxu0  ;;  %v467_v6 = vpop.f32.mrf.mxu1 }
  0xe1   :  { %v208_v3 = vpop.f32.mrf.mxu0  ;;  %v469_v10 = vpop.f32.mrf.mxu1 }
  0xe3   :  { %v217_v5 = vpop.f32.mrf.mxu0  ;;  %v476_v13 = vpop.f32.mrf.mxu1 }
  0xe5   :  { %v219_v8 = vpop.f32.mrf.mxu0  ;;  %v478_v18 = vpop.f32.mrf.mxu1 }
  0xe7   :  { %v299_v9 = vpop.f32.mrf.mxu0 }
  0xe8   :  { %v300_v20 = vadd.f32 %v299_v9, %v206_v1  ;;  %v117_v9 = vsel %vm115_vm14, %v116_v60, %v114_v59 }
  0xe9   :  { %v301_v11 = vpop.f32.mrf.mxu0  ;;  %v635_v30 = vpop.f32.mrf.mxu1 }
  0xea   :  { %v302_v25 = vadd.f32 %v301_v11, %v208_v3  ;;  %v733_v11 = vand.u32 4294901760, %v4394_v61 }
  0xeb   :  { %v306_v12 = vpop.f32.mrf.mxu0  ;;  %v637_v43 = vpop.f32.mrf.mxu1 }
  0xec   :  { %v307_v32 = vadd.f32 %v306_v12, %v217_v5  ;;  %v110_v5 = vsel %vm108_vm13, %v109_v53, %v107_v52  ;;  %v1165_v52 = vld [vmem:[%s5424_s5 + $0x60] sm:$0xff] }
  0xed   :  { %v308_v15 = vpop.f32.mrf.mxu0  ;;  %v642_v58 = vpop.f32.mrf.mxu1  ;;  %v4488_v60 = vand.u32 4294901760, %v1165_v52 }
  0xee   :  { %v309_v39 = vadd.f32 %v308_v15, %v219_v8 }
  0xef   :  { %v383_v17 = vpop.f32.mrf.mxu0 }
  0xf0   :  { %v384_v26 = vadd.f32 %v383_v17, %v300_v20 }
  0xf1   :  { %v385_v21 = vpop.f32.mrf.mxu0 }
  0xf2   :  { %v386_v33 = vadd.f32 %v385_v21, %v302_v25  ;;  %v468_v40 = vadd.f32 %v467_v6, %v384_v26 }
  0xf3   :  { %v391_v27 = vpop.f32.mrf.mxu0 }
  0xf4   :  { %v392_v41 = vadd.f32 %v391_v27, %v307_v32  ;;  %v470_v46 = vadd.f32 %v469_v10, %v386_v33  ;;  %v644_v10 = vpop.f32.mrf.mxu1 }
  0xf5   :  { %v393_v35 = vpop.f32.mrf.mxu0 }
  0xf6   :  { %v394_v47 = vadd.f32 %v393_v35, %v309_v39  ;;  %v477_v54 = vadd.f32 %v476_v13, %v392_v41  ;;  %v1168_v39 = vld [vmem:[%s5424_s5 + $0x78] sm:$0xff]  ;;  %v1183_v41 = vld [vmem:[%s5424_s5 + $0xf0] sm:$0xff] }
  0xf7   :  { %v554_v42 = vpop.f32.mrf.mxu0 }
  0xf8   :  { %v555_v48 = vadd.f32 %v554_v42, %v468_v40  ;;  %v479_v62 = vadd.f32 %v478_v18, %v394_v47  ;;  %v734_v18 = vsub.f32 %v4394_v61, %v733_v11  ;;  %v1167_v42 = vld [vmem:[%s5424_s5 + $0x70] sm:$0xff]  ;;  %v4443_v47 = vand.u32 4294901760, %v1183_v41 }
  0xf9   :  { %v556_v49 = vpop.f32.mrf.mxu0 }
  0xfa   :  { %v557_v55 = vadd.f32 %v556_v49, %v470_v46  ;;  %v636_v56 = vadd.f32 %v635_v30, %v555_v48  ;;  %v735_v25 = vand.u32 4294901760, %v734_v18  ;;  %v4441_v46 = vsub.f32 %v1184_v34, %v4422_v38  ;;  %v1166_v48 = vld [vmem:[%s5424_s5 + $0x68] sm:$0xff] }
  0xfb   :  { %v561_v57 = vpop.f32.mrf.mxu0  ;;  %v4450_v49 = vand.u32 4294901760, %v1167_v42 }
  0xfc   :  { %v648_v63 = vmul.f32 %v636_v56, %v96_v50  ;;  %v562_v0 = vadd.f32 %v561_v57, %v477_v54  ;;  %v638_v1 = vadd.f32 %v637_v43, %v557_v55  ;;  %v4434_v43 = vand.u32 4294901760, %v1168_v39  ;;  %v1181_v50 = vld [vmem:[%s5424_s5 + $0xe0] sm:$0xff]  ;;  %v1180_v55 = vld [vmem:[%s5424_s5 + $0xd8] sm:$0xff] }
  0xfd   :  { %v563_v3 = vpop.f32.mrf.mxu0  ;;  %v4467_v54 = vand.u32 4294901760, %v1166_v48  ;;  %v4475_v56 = vsub.f32 %v1183_v41, %v4443_v47  ;;  %v4477_v57 = vand.u32 4294901760, %v1181_v50  ;;  %v4486_v59 = vsub.f32 %v1167_v42, %v4450_v49 }
  0xfe   :  { %v649_v6 = vmul.f32 %v638_v1, %v103_v51  ;;  %v564_v8 = vadd.f32 %v563_v3, %v479_v62  ;;  %v643_v4 = vadd.f32 %v642_v58, %v562_v0  ;;  %v4397_v12 = vand.u32 4294901760, %v648_v63  ;;  %v1164_v58 = vld [vmem:[%s5424_s5 + $0x58] sm:$0xff]  ;;  %v1179_v62 = vld [vmem:[%s5424_s5 + $0xd0] sm:$0xff] }
  0xff   :  { %v4457_v51 = vand.u32 4294901760, %v1182_v44  ;;  %v4465_v53 = vsub.f32 %v1168_v39, %v4434_v43  ;;  %v1163_v0 = vld [vmem:[%s5424_s5 + $0x50] sm:$0xff]  ;;  %v4506_v1 = vsub.f32 %v1166_v48, %v4467_v54  ;;  %v4508_v3 = vand.u32 4294901760, %v1164_v58 }
 0x100   :  { %v4399_v13 = vand.u32 4294901760, %v649_v6  ;;  %v650_v7 = vmul.f32 %v643_v4, %v110_v5  ;;  %v645_v14 = vadd.f32 %v644_v10, %v564_v8  ;;  %v789_v20 = vsub.f32 %v648_v63, %v4397_v12  ;;  %v1178_v5 = vld [vmem:[%s5424_s5 + $0xc8] sm:$0xff] }
 0x101   :  { %v4496_v63 = vsub.f32 %v1182_v44, %v4457_v51  ;;  %v4518_v8 = vand.u32 4294901760, %v1179_v62  ;;  %v4523_v4 = vsub.f32 %v1165_v52, %v4488_v60  ;;  %v1157_v44 = vld [vmem:[%s5424_s5 + $0x20] sm:$0xff]  ;;  %v1172_v52 = vld [vmem:[%s5424_s5 + $0x98] sm:$0xff] }
 0x102   :  { %v657_v15 = vsel %vm75_vm2, %v650_v7, 0  ;;  %v651_v16 = vmul.f32 %v645_v14, %v117_v9  ;;  %v783_v19 = vsub.f32 %v649_v6, %v4399_v13  ;;  %v790_v28 = vand.u32 4294901760, %v789_v20  ;;  %v1162_v14 = vld [vmem:[%s5424_s5 + $0x48] sm:$0xff] }
 0x103   :  { %v4402_v17 = vand.u32 4294901760, %v657_v15  ;;  %v4516_v6 = vsub.f32 %v1181_v50, %v4477_v57  ;;  %5476 = vst [vmem:[#allocation3_spill] sm:$0xff] %v4518_v8  ;;  %v4525_v9 = vand.u32 4294901760, %v1163_v0  ;;  %v4661_v50 = vand.u32 4294901760, %v1157_v44 }
 0x104   :  { %v660_v21 = vsel %vm75_vm2, %v651_v16, 0  ;;  %v784_v27 = vand.u32 4294901760, %v783_v19  ;;  %v791_v33 = vsub.f32 %v789_v20, %v790_v28  ;;  %v4572_v16 = vand.u32 4294901760, %v1162_v14 }
 0x105   :  { %v777_v22 = vsub.f32 %v657_v15, %v4402_v17  ;;  %v4411_v23 = vand.u32 4294901760, %v660_v21  ;;  %5477 = vst [vmem:[#allocation4_spill] sm:$0xff] %v4525_v9  ;;  %v1177_v15 = vld [vmem:[%s5424_s5 + $0xc0] sm:$0xff]  ;;  %5489 = vst [vmem:[#allocation16_spill] sm:$0xff] %v4661_v50  ;;  %vm2579_vm2 = vcmask 1042432  }
 0x106   :  { %v785_v32 = vsub.f32 %v783_v19, %v784_v27  ;;  %v792_v40 = vand.u32 4294901760, %v791_v33  ;;  %5479 = vst [vmem:[#allocation6_spill] sm:$0xff] %v4572_v16  ;;  %v4577_v18 = vsub.f32 %v1162_v14, %v4572_v16  ;;  %v1174_v33 = vld [vmem:[%s5424_s5 + $0xa8] sm:$0xff]  ;;  %v1171_v14 = vld [vmem:[%s5424_s5 + $0x90] sm:$0xff] }
 0x107   :  { %691 = vmatprep.subr.mxu0 %v4411_v23  ;;  %v771_v24 = vsub.f32 %v660_v21, %v4411_v23  ;;  %v778_v26 = vand.u32 4294901760, %v777_v22 }
 0x108   :  { %693 = vmatpush1.msra.mxu0 %v4402_v17  ;;  %v786_v37 = vand.u32 4294901760, %v785_v32 }
 0x109   :  { %695 = vmatprep.subr.mxu0 %v4399_v13  ;;  %v772_v29 = vand.u32 4294901760, %v771_v24  ;;  %v779_v30 = vsub.f32 %v777_v22, %v778_v26 }
 0x10a   :  { %697 = vmatpush1.msra.mxu0 %v4397_v12 }
 0x10b   :  { %864 = vmatprep.subr.mxu0 %v771_v24  ;;  %736 = vmatmul.mubr.f32.vlgmr.msra.gmra.mxu0 %v735_v25  ;;  %v773_v31 = vsub.f32 %v771_v24, %v772_v29  ;;  %v780_v36 = vand.u32 4294901760, %v779_v30  ;;  %v1160_v24 = vld [vmem:[%s5424_s5 + $0x38] sm:$0xff]  ;;  %v1159_v30 = vld [vmem:[%s5424_s5 + $0x30] sm:$0xff] }
 0x10c   :  { %867 = vmatpush1.msra.mxu0 %v777_v22  ;;  %906 = vmatprep.mubr.f32.mxu0 %v5430_v2  ;;  %v1176_v22 = vld [vmem:[%s5424_s5 + $0xb8] sm:$0xff]  ;;  %v4621_v32 = vand.u32 4294901760, %v1159_v30 }
 0x10d   :  { %870 = vmatprep.subr.mxu0 %v783_v19  ;;  %v774_v35 = vand.u32 4294901760, %v773_v31 }
 0x10e   :  { %873 = vmatpush1.msra.mxu0 %v789_v20  ;;  %v1161_v20 = vld [vmem:[%s5424_s5 + $0x40] sm:$0xff]  ;;  %5485 = vst [vmem:[#allocation12_spill] sm:$0xff] %v4621_v32 }
 0x10f   :  { %775 = vmatprep.subr.mxu1 %v774_v35  ;;  %1024 = vmatprep.subr.mxu0 %v772_v29  ;;  %v4588_v21 = vand.u32 4294901760, %v1161_v20  ;;  %v4631_v35 = vand.u32 4294901760, %v1174_v33 }
 0x110   :  { %781 = vmatpush1.msra.mxu1 %v780_v36  ;;  %909 = vmatmul.mubr.f32.vlgmr.msra.gmra.mxu0 %v4394_v61  ;;  %v4498_v61 = vand.u32 4294901760, %v1180_v55  ;;  %v1158_v36 = vld [vmem:[%s5424_s5 + $0x28] sm:$0xff] }
 0x111   :  { %1028 = vmatpush1.msra.mxu0 %v778_v26  ;;  %787 = vmatprep.subr.mxu1 %v786_v37  ;;  %5481 = vst [vmem:[#allocation8_spill] sm:$0xff] %v4588_v21  ;;  %v4600_v25 = vsub.f32 %v1161_v20, %v4588_v21  ;;  %v4602_v26 = vand.u32 4294901760, %v1160_v24  ;;  %5486 = vst [vmem:[#allocation13_spill] sm:$0xff] %v4631_v35  ;;  %v4639_v37 = vsub.f32 %v1159_v30, %v4621_v32  ;;  %v1170_v30 = vld [vmem:[%s5424_s5 + $0x88] sm:$0xff] }
 0x112   :  { %1032 = vmatprep.subr.mxu0 %v784_v27  ;;  %793 = vmatpush1.msra.mxu1 %v792_v40  ;;  %v4530_v10 = vsub.f32 %v1180_v55, %v4498_v61  ;;  %v1175_v27 = vld [vmem:[%s5424_s5 + $0xb0] sm:$0xff]  ;;  %v4641_v39 = vand.u32 4294901760, %v1158_v36  ;;  %v1173_v40 = vld [vmem:[%s5424_s5 + $0xa0] sm:$0xff]  ;;  %v4649_v41 = vsub.f32 %v1174_v33, %v4631_v35  ;;  %v4691_v20 = vand.u32 4294901760, %v1171_v14 }
 0x113   :  { %1036 = vmatpush1.msra.mxu0 %v790_v28  ;;  %828 = vmatmul.mubr.f32.vlgmr.msra.gmra.mxu1 %v4380_v45  ;;  %5483 = vst [vmem:[#allocation10_spill] sm:$0xff] %v4602_v26  ;;  %v4611_v29 = vand.u32 4294901760, %v1175_v27  ;;  %v4619_v31 = vsub.f32 %v1160_v24, %v4602_v26  ;;  %v4651_v42 = vand.u32 4294901760, %v1173_v40 }
 0x114   :  { %944 = vmatprep.subr.mxu1 %v4411_v23  ;;  %983 = vmatprep.mubr.f32.mxu1 %v5430_v2  ;;  %5487 = vst [vmem:[#allocation14_spill] sm:$0xff] %v4641_v39  ;;  %v4659_v48 = vsub.f32 %v1158_v36, %v4641_v39  ;;  %5492 = vst [vmem:[#allocation19_spill] sm:$0xff] %v4691_v20  ;;  %v4709_v33 = vsub.f32 %v1171_v14, %v4691_v20  ;;  %v4711_v36 = vand.u32 4294901760, %v1170_v30 }
 0x115   :  { %946 = vmatpush1.msra.mxu1 %v4402_v17  ;;  %1069 = vmatprep.mubr.f32.mxu0 %v5430_v2  ;;  %5484 = vst [vmem:[#allocation11_spill] sm:$0xff] %v4611_v29  ;;  %v4629_v34 = vsub.f32 %v1175_v27, %v4611_v29  ;;  %5488 = vst [vmem:[#allocation15_spill] sm:$0xff] %v4651_v42  ;;  %v4669_v55 = vsub.f32 %v1173_v40, %v4651_v42  ;;  %v1154_v40 = vld [vmem:[%s5424_s5 + $0x8] sm:$0xff] }
 0x116   :  { %948 = vmatprep.subr.mxu1 %v4399_v13  ;;  %1071 = vmatmul.mubr.f32.vlgmr.msra.gmra.mxu0 %v4380_v45  ;;  %5494 = vst [vmem:[#allocation21_spill] sm:$0xff] %v4711_v36  ;;  %v4729_v14 = vsub.f32 %v1170_v30, %v4711_v36 }
 0x117   :  { %950 = vmatpush1.msra.mxu1 %v4397_v12  ;;  %4058 = vmatprep.subr.mxu0 %v4441_v46 }
 0x118   :  { %987 = vmatmul.mubr.f32.vlgmr.msra.gmra.mxu1 %v733_v11  ;;  %1106 = vmatprep.subr.mxu1 %v4411_v23  ;;  %v4532_v11 = vand.u32 4294901760, %v1178_v5  ;;  %v4594_v23 = vand.u32 4294901760, %v1176_v22 }
 0x119   :  { %1108 = vmatpush1.msra.mxu1 %v4402_v17  ;;  %1145 = vmatprep.mubr.f32.mxu1 %v5430_v2  ;;  %v4574_v17 = vand.u32 4294901760, %v1177_v15 }
 0x11a   :  { %1110 = vmatprep.subr.mxu1 %v4399_v13  ;;  %4059 = vmatpush3.msra.mxu0 %v4465_v53  ;;  %5478 = vst [vmem:[#allocation5_spill] sm:$0xff] %v4532_v11  ;;  %v4547_v13 = vsub.f32 %v1163_v0, %v4525_v9  ;;  %v4552_v7 = vsub.f32 %v1178_v5, %v4532_v11  ;;  %5482 = vst [vmem:[#allocation9_spill] sm:$0xff] %v4594_v23 }
 0x11b   :  { %1112 = vmatpush1.msra.mxu1 %v4397_v12  ;;  %4060 = vmatprep.subr.mxu0 %v4475_v56  ;;  %v4542_v12 = vsub.f32 %v1179_v62, %v4518_v8  ;;  %5480 = vst [vmem:[#allocation7_spill] sm:$0xff] %v4574_v17  ;;  %v4580_v19 = vsub.f32 %v1177_v15, %v4574_v17  ;;  %v1156_v62 = vld [vmem:[%s5424_s5 + $0x18] sm:$0xff] }
 0x11c   :  { %1147 = vmatmul.mubr.f32.vlgmr.msra.gmra.mxu1 %v4380_v45  ;;  %4061 = vmatpush3.msra.mxu0 %v4486_v59  ;;  %v4537_v45 = vsub.f32 %v1164_v58, %v4508_v3  ;;  %v4609_v28 = vsub.f32 %v1176_v22, %v4594_v23  ;;  %v4671_v58 = vand.u32 4294901760, %v1172_v52  ;;  %v4679_v0 = vsub.f32 %v1157_v44, %v4661_v50  ;;  %v1155_v22 = vld [vmem:[%s5424_s5 + $0x10] sm:$0xff] }
 0x11d   :  { %4062 = vmatprep.subr.mxu0 %v4496_v63  ;;  %3988 = vmatprep.subr.mxu1 %v4422_v38  ;;  %v4681_v5 = vand.u32 4294901760, %v1156_v62  ;;  %v4701_v27 = vand.u32 4294901760, %v1155_v22 }
 0x11e   :  { %4063 = vmatpush3.msra.mxu0 %v4506_v1  ;;  %3989 = vmatpush3.msra.mxu1 %v4434_v43  ;;  %5490 = vst [vmem:[#allocation17_spill] sm:$0xff] %v4671_v58  ;;  %v4689_v15 = vsub.f32 %v1172_v52, %v4671_v58  ;;  %v4721_v52 = vand.u32 4294901760, %v1154_v40 }
 0x11f   :  { %4064 = vmatprep.subr.mxu0 %v4516_v6  ;;  %3990 = vmatprep.subr.mxu1 %v4443_v47  ;;  %5491 = vst [vmem:[#allocation18_spill] sm:$0xff] %v4681_v5  ;;  %v4699_v24 = vsub.f32 %v1156_v62, %v4681_v5  ;;  %5493 = vst [vmem:[#allocation20_spill] sm:$0xff] %v4701_v27  ;;  %v4719_v44 = vsub.f32 %v1155_v22, %v4701_v27  ;;  %v1169_v62 = vld [vmem:[%s5424_s5 + $0x80] sm:$0xff] }
 0x120   :  { %4065 = vmatpush3.msra.mxu0 %v4523_v4  ;;  %3991 = vmatpush3.msra.mxu1 %v4450_v49  ;;  %5495 = vst [vmem:[#allocation22_spill] sm:$0xff] %v4721_v52  ;;  %v4731_v2 = vand.u32 4294901760, %v1169_v62  ;;  %v1153_v22 = vld [vmem:[%s5424_s5] sm:$0xff] }
 0x121   :  { %4066 = vmatprep.subr.mxu0 %v4530_v10  ;;  %3992 = vmatprep.subr.mxu1 %v4457_v51 }
 0x122   :  { %4067 = vmatpush3.msra.mxu0 %v4537_v45  ;;  %3993 = vmatpush3.msra.mxu1 %v4467_v54  ;;  %5496 = vst [vmem:[#allocation23_spill] sm:$0xff] %v4731_v2  ;;  %v4746_v30 = vsub.f32 %v1169_v62, %v4731_v2 }
 0x123   :  { %4068 = vmatprep.subr.mxu0 %v4542_v12  ;;  %3994 = vmatprep.subr.mxu1 %v4477_v57 }
 0x124   :  { %4069 = vmatpush3.msra.mxu0 %v4547_v13  ;;  %3995 = vmatpush3.msra.mxu1 %v4488_v60 }
 0x125   :  { %4070 = vmatprep.subr.mxu0 %v4552_v7  ;;  %3996 = vmatprep.subr.mxu1 %v4498_v61 }
 0x126   :  { %3997 = vmatpush3.msra.mxu1 %v4508_v3  ;;  %4071 = vmatpush3.msra.mxu0 %v4577_v18 }
 0x127   :  { %3998 = vmatprep.subr.mxu1 %v4518_v8  ;;  %4072 = vmatprep.subr.mxu0 %v4580_v19 }
 0x128   :  { %3999 = vmatpush3.msra.mxu1 %v4525_v9  ;;  %4073 = vmatpush3.msra.mxu0 %v4600_v25 }
 0x129   :  { %4000 = vmatprep.subr.mxu1 %v4532_v11  ;;  %4074 = vmatprep.subr.mxu0 %v4609_v28 }
 0x12a   :  { %4001 = vmatpush3.msra.mxu1 %v4572_v16  ;;  %4075 = vmatpush3.msra.mxu0 %v4619_v31 }
 0x12b   :  { %4002 = vmatprep.subr.mxu1 %v4574_v17  ;;  %4076 = vmatprep.subr.mxu0 %v4629_v34 }
 0x12c   :  { %4003 = vmatpush3.msra.mxu1 %v4588_v21  ;;  %4077 = vmatpush3.msra.mxu0 %v4639_v37 }
 0x12d   :  { %4004 = vmatprep.subr.mxu1 %v4594_v23  ;;  %4078 = vmatprep.subr.mxu0 %v4649_v41 }
 0x12e   :  { %4005 = vmatpush3.msra.mxu1 %v4602_v26  ;;  %4079 = vmatpush3.msra.mxu0 %v4659_v48 }
 0x12f   :  { %4006 = vmatprep.subr.mxu1 %v4611_v29  ;;  %4080 = vmatprep.subr.mxu0 %v4669_v55 }
 0x130   :  { %4007 = vmatpush3.msra.mxu1 %v4621_v32  ;;  %4081 = vmatpush3.msra.mxu0 %v4679_v0 }
 0x131   :  { %4008 = vmatprep.subr.mxu1 %v4631_v35  ;;  %4082 = vmatprep.subr.mxu0 %v4689_v15 }
 0x132   :  { %4009 = vmatpush3.msra.mxu1 %v4641_v39  ;;  %4083 = vmatpush3.msra.mxu0 %v4699_v24 }
 0x133   :  { %4010 = vmatprep.subr.mxu1 %v4651_v42  ;;  %4084 = vmatprep.subr.mxu0 %v4709_v33 }
 0x134   :  { %4011 = vmatpush3.msra.mxu1 %v4661_v50  ;;  %4085 = vmatpush3.msra.mxu0 %v4719_v44 }
 0x135   :  { %4012 = vmatprep.subr.mxu1 %v4671_v58  ;;  %4086 = vmatprep.subr.mxu0 %v4729_v14 }
 0x136   :  { %4013 = vmatpush3.msra.mxu1 %v4681_v5  ;;  %v4741_v5 = vand.u32 4294901760, %v1153_v22 }
 0x137   :  { %4014 = vmatprep.subr.mxu1 %v4691_v20  ;;  %v4739_v20 = vsub.f32 %v1154_v40, %v4721_v52  ;;  %v1412_v40 = vand.u32 4294901760, %v4441_v46 }
 0x138   :  { %4015 = vmatpush3.msra.mxu1 %v4701_v27  ;;  %5497 = vst [vmem:[#allocation24_spill] sm:$0xff] %v4741_v5 }
 0x139   :  { %4016 = vmatprep.subr.mxu1 %v4711_v36  ;;  %4087 = vmatpush3.msra.mxu0 %v4739_v20  ;;  %v4751_v36 = vsub.f32 %v1153_v22, %v4741_v5 }
 0x13a   :  { %4017 = vmatpush3.msra.mxu1 %v4721_v52  ;;  %4088 = vmatprep.subr.mxu0 %v4746_v30  ;;  %v1413_v52 = vsub.f32 %v4441_v46, %v1412_v40 }
 0x13b   :  { %4018 = vmatprep.subr.mxu1 %v4731_v2  ;;  %4089 = vmatpush3.msra.mxu0 %v4751_v36 }
 0x13c   :  { %4019 = vmatpush3.msra.mxu1 %v4741_v5  ;;  %4128 = vmatprep.subr.mxu0 %v1412_v40  ;;  %v1414_v62 = vand.u32 4294901760, %v1413_v52 }
 0x13e   :  { %4023 = vmatprep.subr.mxu1 %v1414_v62 }
 0x1cb   :  { %v737_v27 = vpop.f32.mrf.mxu0 }
 0x1cd   :  { %v739_v2 = vpop.f32.mrf.mxu0 }
 0x1d0   :  { %v910_v58 = vpop.f32.mrf.mxu0 }
 0x1d2   :  { %v912_v22 = vpop.f32.mrf.mxu0 }
 0x1d3   :  { %v829_v50 = vpop.f32.mrf.mxu1 }
 0x1d4   :  { %v830_v42 = vadd.f32 %v829_v50, %v737_v27 }
 0x1d5   :  { %v831_v39 = vpop.f32.mrf.mxu1 }
 0x1d6   :  { %v832_v35 = vadd.f32 %v831_v39, %v739_v2  ;;  %v911_v5 = vadd.f32 %v910_v58, %v830_v42  ;;  %v1072_v26 = vpop.f32.mrf.mxu0  ;;  %v1314_v39 = vand.u32 4294901760, %v4506_v1  ;;  %v1433_v58 = vand.u32 4294901760, %v4516_v6 }
 0x1d8   :  { %v913_v32 = vadd.f32 %v912_v22, %v832_v35  ;;  %v988_v29 = vpop.f32.mrf.mxu1  ;;  %v1074_v11 = vpop.f32.mrf.mxu0 }
 0x1d9   :  { %v989_v23 = vadd.f32 %v988_v29, %v911_v5 }
 0x1da   :  { %v990_v21 = vpop.f32.mrf.mxu1 }
 0x1db   :  { %v991_v17 = vadd.f32 %v990_v21, %v913_v32  ;;  %v1073_v16 = vadd.f32 %v1072_v26, %v989_v23  ;;  %v1300_v21 = vand.u32 4294901760, %v4465_v53  ;;  %v1419_v23 = vand.u32 4294901760, %v4475_v56 }
 0x1dc   :  { %v1148_v46 = vpop.f32.mrf.mxu1 }
 0x1dd   :  { %v1075_v52 = vadd.f32 %v1074_v11, %v991_v17  ;;  %v1149_v40 = vadd.f32 %v1148_v46, %v1073_v16  ;;  %v1307_v11 = vand.u32 4294901760, %v4486_v59  ;;  %v1301_v17 = vsub.f32 %v4465_v53, %v1300_v21 }
 0x1de   :  { %v1150_v62 = vpop.f32.mrf.mxu1  ;;  %v1420_v32 = vsub.f32 %v4475_v56, %v1419_v23  ;;  %v1321_v56 = vand.u32 4294901760, %v4523_v4  ;;  %v1315_v46 = vsub.f32 %v4506_v1, %v1314_v39 }
 0x1df   :  { %v4758_v9 = vand.u32 4294901760, %v1149_v40  ;;  %v1151_v8 = vadd.f32 %v1150_v62, %v1075_v52  ;;  %v1308_v53 = vsub.f32 %v4486_v59, %v1307_v11  ;;  %v1302_v22 = vand.u32 4294901760, %v1301_v17 }
 0x1e0   :  { %v1440_v62 = vand.u32 4294901760, %v4530_v10  ;;  %v1447_v17 = vand.u32 4294901760, %v4542_v12 }
 0x1e1   :  { %v4761_v50 = vsub.f32 %v1149_v40, %v4758_v9  ;;  %v4763_v2 = vand.u32 4294901760, %v1151_v8  ;;  %v1421_v40 = vand.u32 4294901760, %v1420_v32  ;;  %v1309_v59 = vand.u32 4294901760, %v1308_v53 }
 0x1e2   :  { %v1441_v1 = vsub.f32 %v4530_v10, %v1440_v62  ;;  %v1342_v10 = vand.u32 4294901760, %v4577_v18 }
 0x1e3   :  { %v1289_v35 = vand.u32 4294901760, %v4761_v50  ;;  %v4767_v29 = vsub.f32 %v1151_v8, %v4763_v2  ;;  %v1426_v8 = vand.u32 4294901760, %v4496_v63 }
 0x1e5   :  { %1659 = vmatprep.mubr.f32.mxu0 %v4767_v29  ;;  %v1283_v16 = vand.u32 4294901760, %v4767_v29  ;;  %v1290_v26 = vsub.f32 %v4761_v50, %v1289_v35  ;;  %v1427_v5 = vsub.f32 %v4496_v63, %v1426_v8  ;;  %v1322_v63 = vsub.f32 %v4523_v4, %v1321_v56 }
 0x1e6   :  { %1662 = vmatmul.mubr.f32.vlgmr.msra.gmra.mxu0 %v4761_v50  ;;  %v1454_v4 = vand.u32 4294901760, %v4552_v7 }
 0x1e7   :  { %4129 = vmatpush3.msra.mxu0 %v1300_v21  ;;  %1936 = vmatprep.mubr.f32.mxu0 %v4763_v2  ;;  %v1284_v42 = vsub.f32 %v4767_v29, %v1283_v16  ;;  %v1291_v52 = vand.u32 4294901760, %v1290_v26  ;;  %v1434_v21 = vsub.f32 %v4516_v6, %v1433_v58  ;;  %v1316_v26 = vand.u32 4294901760, %v1315_v46  ;;  %v5500_v29 = vld [vmem:[#allocation4_spill] sm:$0xff] }
 0x1e8   :  { %4130 = vmatprep.subr.mxu0 %v1419_v23  ;;  %v1328_v23 = vand.u32 4294901760, %v4537_v45  ;;  %v1468_v46 = vand.u32 4294901760, %v4609_v28 }
 0x1e9   :  { %4131 = vmatpush3.msra.mxu0 %v1307_v11  ;;  %v1285_v27 = vand.u32 4294901760, %v1284_v42  ;;  %v1428_v11 = vand.u32 4294901760, %v1427_v5  ;;  %v1435_v32 = vand.u32 4294901760, %v1434_v21  ;;  %v1323_v42 = vand.u32 4294901760, %v1322_v63 }
 0x1ea   :  { %4132 = vmatprep.subr.mxu0 %v1426_v8  ;;  %v1335_v8 = vand.u32 4294901760, %v4547_v13  ;;  %v1329_v6 = vsub.f32 %v4537_v45, %v1328_v23  ;;  %v1461_v45 = vand.u32 4294901760, %v4580_v19  ;;  %v1455_v5 = vsub.f32 %v4552_v7, %v1454_v4 }
 0x1eb   :  { %4133 = vmatpush3.msra.mxu0 %v1314_v39  ;;  %1286 = vmatprep.mubr.f32.mxu1 %v1285_v27  ;;  %v1448_v39 = vsub.f32 %v4542_v12, %v1447_v17  ;;  %v1343_v12 = vsub.f32 %v4577_v18, %v1342_v10  ;;  %v1475_v21 = vand.u32 4294901760, %v4629_v34  ;;  %v1469_v18 = vsub.f32 %v4609_v28, %v1468_v46 }
 0x1ec   :  { %4134 = vmatprep.subr.mxu0 %v1433_v58  ;;  %1292 = vmatmul.mubr.f32.vlgmr.msra.gmra.mxu1 %v1291_v52  ;;  %v1336_v53 = vsub.f32 %v4547_v13, %v1335_v8  ;;  %v1442_v58 = vand.u32 4294901760, %v1441_v1  ;;  %v1330_v27 = vand.u32 4294901760, %v1329_v6  ;;  %v1462_v13 = vsub.f32 %v4580_v19, %v1461_v45 }
 0x1ed   :  { %4024 = vmatpush3.msra.mxu1 %v1302_v22  ;;  %4135 = vmatpush3.msra.mxu0 %v1321_v56  ;;  %v1349_v22 = vand.u32 4294901760, %v4600_v25  ;;  %v1449_v56 = vand.u32 4294901760, %v1448_v39  ;;  %v1370_v1 = vand.u32 4294901760, %v4659_v48  ;;  %v1496_v39 = vand.u32 4294901760, %v4689_v15 }
 0x1ee   :  { %4025 = vmatprep.subr.mxu1 %v1421_v40  ;;  %1522 = vmatprep.mubr.f32.mxu1 %v4763_v2  ;;  %v1337_v52 = vand.u32 4294901760, %v1336_v53  ;;  %v1356_v40 = vand.u32 4294901760, %v4619_v31  ;;  %v1463_v63 = vand.u32 4294901760, %v1462_v13  ;;  %v1517_v13 = vand.u32 4294901760, %v4746_v30 }
 0x1ef   :  { %4136 = vmatprep.subr.mxu0 %v1440_v62  ;;  %4026 = vmatpush3.msra.mxu1 %v1309_v59  ;;  %v1350_v7 = vsub.f32 %v4600_v25, %v1349_v22  ;;  %v1456_v62 = vand.u32 4294901760, %v1455_v5  ;;  %v1344_v59 = vand.u32 4294901760, %v1343_v12  ;;  %v1476_v25 = vsub.f32 %v4629_v34, %v1475_v21 }
 0x1f0   :  { %4137 = vmatpush3.msra.mxu0 %v1328_v23  ;;  %4027 = vmatprep.subr.mxu1 %v1428_v11  ;;  %v1363_v23 = vand.u32 4294901760, %v4639_v37  ;;  %v1357_v19 = vsub.f32 %v4619_v31, %v1356_v40  ;;  %v1482_v11 = vand.u32 4294901760, %v4649_v41  ;;  %v1371_v34 = vsub.f32 %v4659_v48, %v1370_v1 }
 0x1f1   :  { %4138 = vmatprep.subr.mxu0 %v1447_v17  ;;  %4028 = vmatpush3.msra.mxu1 %v1316_v26  ;;  %v1351_v17 = vand.u32 4294901760, %v1350_v7  ;;  %v1470_v26 = vand.u32 4294901760, %v1469_v18  ;;  %v1497_v48 = vsub.f32 %v4689_v15, %v1496_v39  ;;  %v1391_v5 = vand.u32 4294901760, %v4719_v44 }
 0x1f2   :  { %4139 = vmatpush3.msra.mxu0 %v1335_v8  ;;  %4029 = vmatprep.subr.mxu1 %v1435_v32  ;;  %v1364_v28 = vsub.f32 %v4639_v37, %v1363_v23  ;;  %v1489_v8 = vand.u32 4294901760, %v4669_v55  ;;  %v1483_v31 = vsub.f32 %v4649_v41, %v1482_v11  ;;  %v1358_v6 = vand.u32 4294901760, %v1357_v19  ;;  %v5503_v19 = vld [vmem:[#allocation7_spill] sm:$0xff] }
 0x1f3   :  { %4140 = vmatprep.subr.mxu0 %v1454_v4  ;;  %4030 = vmatpush3.msra.mxu1 %v1323_v42  ;;  %v1377_v32 = vand.u32 4294901760, %v4679_v0  ;;  %v1477_v4 = vand.u32 4294901760, %v1476_v25  ;;  %v1392_v15 = vsub.f32 %v4719_v44, %v1391_v5  ;;  %v5506_v25 = vld [vmem:[#allocation10_spill] sm:$0xff] }
 0x1f4   :  { %4141 = vmatpush3.msra.mxu0 %v1342_v10  ;;  %4031 = vmatprep.subr.mxu1 %v1442_v58  ;;  %v1490_v37 = vsub.f32 %v4669_v55, %v1489_v8  ;;  %v1365_v42 = vand.u32 4294901760, %v1364_v28  ;;  %v1384_v10 = vand.u32 4294901760, %v4699_v24  ;;  %v1484_v53 = vand.u32 4294901760, %v1483_v31  ;;  %v5509_v28 = vld [vmem:[#allocation13_spill] sm:$0xff]  ;;  %v5512_v31 = vld [vmem:[#allocation16_spill] sm:$0xff] }
 0x1f5   :  { %4142 = vmatprep.subr.mxu0 %v1461_v45  ;;  %4032 = vmatpush3.msra.mxu1 %v1330_v27  ;;  %v1378_v41 = vsub.f32 %v4679_v0, %v1377_v32  ;;  %v1503_v58 = vand.u32 4294901760, %v4709_v33  ;;  %v1372_v45 = vand.u32 4294901760, %v1371_v34  ;;  %v1393_v44 = vand.u32 4294901760, %v1392_v15  ;;  %v5515_v34 = vld [vmem:[#allocation19_spill] sm:$0xff] }
 0x1f6   :  { %4143 = vmatpush3.msra.mxu0 %v1349_v22  ;;  %4033 = vmatprep.subr.mxu1 %v1449_v56  ;;  %v1385_v55 = vsub.f32 %v4699_v24, %v1384_v10  ;;  %v1491_v27 = vand.u32 4294901760, %v1490_v37  ;;  %v1510_v22 = vand.u32 4294901760, %v4729_v14  ;;  %v1398_v56 = vand.u32 4294901760, %v4739_v20  ;;  %v5518_v37 = vld [vmem:[#allocation22_spill] sm:$0xff] }
 0x1f7   :  { %4144 = vmatprep.subr.mxu0 %v1468_v46  ;;  %4034 = vmatpush3.msra.mxu1 %v1337_v52  ;;  %v1504_v0 = vsub.f32 %v4709_v33, %v1503_v58  ;;  %v1379_v12 = vand.u32 4294901760, %v1378_v41  ;;  %v1498_v46 = vand.u32 4294901760, %v1497_v48 }
 0x1f8   :  { %4145 = vmatpush3.msra.mxu0 %v1356_v40  ;;  %4035 = vmatprep.subr.mxu1 %v1456_v62  ;;  %v1511_v24 = vsub.f32 %v4729_v14, %v1510_v22  ;;  %v1386_v52 = vand.u32 4294901760, %v1385_v55  ;;  %v1405_v40 = vand.u32 4294901760, %v4751_v36  ;;  %v1399_v33 = vsub.f32 %v4739_v20, %v1398_v56 }
 0x1f9   :  { %4146 = vmatprep.subr.mxu0 %v1475_v21  ;;  %4036 = vmatpush3.msra.mxu1 %v1344_v59  ;;  %v1505_v7 = vand.u32 4294901760, %v1504_v0  ;;  %v1518_v62 = vsub.f32 %v4746_v30, %v1517_v13  ;;  %v5498_v30 = vmov 0.0  }
 0x1fa   :  { %4147 = vmatpush3.msra.mxu0 %v1363_v23  ;;  %4037 = vmatprep.subr.mxu1 %v1463_v63  ;;  %v1406_v21 = vsub.f32 %v4751_v36, %v1405_v40  ;;  %v1512_v14 = vand.u32 4294901760, %v1511_v24  ;;  %v1400_v18 = vand.u32 4294901760, %v1399_v33  ;;  %v5499_v36 = vld [vmem:[#allocation3_spill] sm:$0xff]  ;;  %v5502_v23 = vld [vmem:[#allocation6_spill] sm:$0xff]  ;;  %v5504_v63 = vld [vmem:[#allocation8_spill] sm:$0xff] }
 0x1fb   :  { %4148 = vmatprep.subr.mxu0 %v1482_v11  ;;  %4038 = vmatpush3.msra.mxu1 %v1351_v17  ;;  %v1519_v59 = vand.u32 4294901760, %v1518_v62  ;;  %v5505_v11 = vld [vmem:[#allocation9_spill] sm:$0xff]  ;;  %v5507_v17 = vld [vmem:[#allocation11_spill] sm:$0xff] }
 0x1fc   :  { %4149 = vmatpush3.msra.mxu0 %v1370_v1  ;;  %4039 = vmatprep.subr.mxu1 %v1470_v26  ;;  %v1407_v20 = vand.u32 4294901760, %v1406_v21  ;;  %v5508_v1 = vld [vmem:[#allocation12_spill] sm:$0xff]  ;;  %v5510_v26 = vld [vmem:[#allocation14_spill] sm:$0xff] }
 0x1fd   :  { %4150 = vmatprep.subr.mxu0 %v1489_v8  ;;  %4040 = vmatpush3.msra.mxu1 %v1358_v6  ;;  %v5511_v8 = vld [vmem:[#allocation15_spill] sm:$0xff]  ;;  %v5513_v6 = vld [vmem:[#allocation17_spill] sm:$0xff] }
 0x1fe   :  { %4151 = vmatpush3.msra.mxu0 %v1377_v32  ;;  %4041 = vmatprep.subr.mxu1 %v1477_v4  ;;  %v5514_v32 = vld [vmem:[#allocation18_spill] sm:$0xff]  ;;  %v5516_v4 = vld [vmem:[#allocation20_spill] sm:$0xff] }
 0x1ff   :  { %4152 = vmatprep.subr.mxu0 %v1496_v39  ;;  %4042 = vmatpush3.msra.mxu1 %v1365_v42  ;;  %v5517_v39 = vld [vmem:[#allocation21_spill] sm:$0xff]  ;;  %v5519_v42 = vld [vmem:[#allocation23_spill] sm:$0xff] }
 0x200   :  { %4153 = vmatpush3.msra.mxu0 %v1384_v10  ;;  %4043 = vmatprep.subr.mxu1 %v1484_v53  ;;  %v5520_v10 = vld [vmem:[#allocation24_spill] sm:$0xff] }
 0x201   :  { %4154 = vmatprep.subr.mxu0 %v1503_v58  ;;  %4044 = vmatpush3.msra.mxu1 %v1372_v45 }
 0x202   :  { %4155 = vmatpush3.msra.mxu0 %v1391_v5  ;;  %4045 = vmatprep.subr.mxu1 %v1491_v27 }
 0x203   :  { %4156 = vmatprep.subr.mxu0 %v1510_v22  ;;  %4046 = vmatpush3.msra.mxu1 %v1379_v12 }
 0x204   :  { %4157 = vmatpush3.msra.mxu0 %v1398_v56  ;;  %4047 = vmatprep.subr.mxu1 %v1498_v46 }
 0x205   :  { %4158 = vmatprep.subr.mxu0 %v1517_v13  ;;  %4048 = vmatpush3.msra.mxu1 %v1386_v52 }
 0x206   :  { %4159 = vmatpush3.msra.mxu0 %v1405_v40  ;;  %4049 = vmatprep.subr.mxu1 %v1505_v7 }
 0x207   :  { %1938 = vmatmul.mubr.f32.vlgmr.msra.gmra.mxu0 %v4758_v9  ;;  %4050 = vmatpush3.msra.mxu1 %v1393_v44 }
 0x208   :  { %4051 = vmatprep.subr.mxu1 %v1512_v14  ;;  %2143 = vmatprep.mubr.f32.mxu0 %v5498_v30 }
 0x209   :  { %4052 = vmatpush3.msra.mxu1 %v1400_v18 }
 0x20a   :  { %4053 = vmatprep.subr.mxu1 %v1519_v59 }
 0x20b   :  { %4054 = vmatpush3.msra.mxu1 %v1407_v20 }
 0x20c   :  { %1524 = vmatmul.mubr.f32.vlgmr.msra.gmra.mxu1 %v4758_v9  ;;  %4093 = vmatprep.subr.mxu1 %v4422_v38 }
 0x20d   :  { %4094 = vmatpush3.msra.mxu1 %v4434_v43  ;;  %1766 = vmatprep.mubr.f32.mxu1 %v1283_v16  ;;  %v5501_v16 = vld [vmem:[#allocation5_spill] sm:$0xff] }
 0x20e   :  { %4095 = vmatprep.subr.mxu1 %v4443_v47 }
 0x20f   :  { %4096 = vmatpush3.msra.mxu1 %v4450_v49 }
 0x210   :  { %4097 = vmatprep.subr.mxu1 %v4457_v51 }
 0x211   :  { %4098 = vmatpush3.msra.mxu1 %v4467_v54 }
 0x212   :  { %4099 = vmatprep.subr.mxu1 %v4477_v57 }
 0x213   :  { %4100 = vmatpush3.msra.mxu1 %v4488_v60 }
 0x214   :  { %4101 = vmatprep.subr.mxu1 %v4498_v61 }
 0x215   :  { %4102 = vmatpush3.msra.mxu1 %v4508_v3 }
 0x216   :  { %4103 = vmatprep.subr.mxu1 %v5499_v36 }
 0x217   :  { %4104 = vmatpush3.msra.mxu1 %v5500_v29 }
 0x218   :  { %4105 = vmatprep.subr.mxu1 %v5501_v16 }
 0x219   :  { %4106 = vmatpush3.msra.mxu1 %v5502_v23 }
 0x21a   :  { %4107 = vmatprep.subr.mxu1 %v5503_v19 }
 0x21b   :  { %4108 = vmatpush3.msra.mxu1 %v5504_v63 }
 0x21c   :  { %4109 = vmatprep.subr.mxu1 %v5505_v11 }
 0x21d   :  { %4110 = vmatpush3.msra.mxu1 %v5506_v25 }
 0x21e   :  { %4111 = vmatprep.subr.mxu1 %v5507_v17 }
 0x21f   :  { %4112 = vmatpush3.msra.mxu1 %v5508_v1 }
 0x220   :  { %4113 = vmatprep.subr.mxu1 %v5509_v28 }
 0x221   :  { %4114 = vmatpush3.msra.mxu1 %v5510_v26 }
 0x222   :  { %4115 = vmatprep.subr.mxu1 %v5511_v8 }
 0x223   :  { %4116 = vmatpush3.msra.mxu1 %v5512_v31 }
 0x224   :  { %4117 = vmatprep.subr.mxu1 %v5513_v6 }
 0x225   :  { %4118 = vmatpush3.msra.mxu1 %v5514_v32 }
 0x226   :  { %4119 = vmatprep.subr.mxu1 %v5515_v34 }
 0x227   :  { %4120 = vmatpush3.msra.mxu1 %v5516_v4 }
 0x228   :  { %4121 = vmatprep.subr.mxu1 %v5517_v39 }
 0x229   :  { %4122 = vmatpush3.msra.mxu1 %v5518_v37 }
 0x22a   :  { %4123 = vmatprep.subr.mxu1 %v5519_v42 }
 0x22b   :  { %4124 = vmatpush3.msra.mxu1 %v5520_v10 }
 0x22c   :  { %1770 = vmatmul.mubr.f32.vlgmr.msra.gmra.mxu1 %v1289_v35  ;;  %4163 = vmatprep.subr.mxu1 %v4422_v38  ;;  %v2070_v38 = vld [vmem:[%s5425_s6 + $0x18] sm:$0xff] }
 0x22d   :  { %4164 = vmatpush3.msra.mxu1 %v4434_v43  ;;  %2040 = vmatprep.mubr.f32.mxu1 %v4763_v2  ;;  %v2069_v43 = vld [vmem:[%s5425_s6 + $0x10] sm:$0xff] }
 0x22e   :  { %4165 = vmatprep.subr.mxu1 %v4443_v47  ;;  %v2068_v47 = vld [vmem:[%s5425_s6 + $0x8] sm:$0xff] }
 0x22f   :  { %4166 = vmatpush3.msra.mxu1 %v4450_v49  ;;  %v4925_v49 = vand.u32 4294901760, %v2070_v38 }
 0x230   :  { %4167 = vmatprep.subr.mxu1 %v4457_v51  ;;  %v4927_v51 = vand.u32 4294901760, %v2069_v43 }
 0x231   :  { %4168 = vmatpush3.msra.mxu1 %v4467_v54  ;;  %v4929_v54 = vand.u32 4294901760, %v2068_v47  ;;  %2104 = vmatprep.subr.mxu0 %v4925_v49 }
 0x232   :  { %4169 = vmatprep.subr.mxu1 %v4477_v57  ;;  %v2067_v57 = vld [vmem:[%s5425_s6] sm:$0xff]  ;;  %2106 = vmatpush1.msra.mxu0 %v4927_v51 }
 0x233   :  { %4170 = vmatpush3.msra.mxu1 %v4488_v60  ;;  %v4934_v60 = vand.u32 4294901760, %v2067_v57  ;;  %2108 = vmatprep.subr.mxu0 %v4929_v54 }
 0x234   :  { %4171 = vmatprep.subr.mxu1 %v4498_v61  ;;  %v4937_v61 = vsub.f32 %v2070_v38, %v4925_v49 }
 0x235   :  { %4172 = vmatpush3.msra.mxu1 %v4508_v3  ;;  %v4940_v3 = vsub.f32 %v2069_v43, %v4927_v51  ;;  %v4947_v50 = vsub.f32 %v2067_v57, %v4934_v60  ;;  %2110 = vmatpush1.msra.mxu0 %v4934_v60 }
 0x236   :  { %4173 = vmatprep.subr.mxu1 %v5499_v36  ;;  %v2185_v2 = vand.u32 4294901760, %v4937_v61  ;;  %2277 = vmatprep.subr.mxu0 %v4937_v61 }
 0x237   :  { %4174 = vmatpush3.msra.mxu1 %v5500_v29  ;;  %v2191_v35 = vand.u32 4294901760, %v4940_v3  ;;  %v2203_v53 = vand.u32 4294901760, %v4947_v50 }
 0x238   :  { %4175 = vmatprep.subr.mxu1 %v5501_v16  ;;  %v2186_v58 = vsub.f32 %v4937_v61, %v2185_v2  ;;  %v2567_v61 = vld [vmem:[%s5426_s4 + $0x8] sm:$0xff] }
 0x239   :  { %4176 = vmatpush3.msra.mxu1 %v5502_v23  ;;  %v2192_v48 = vsub.f32 %v4940_v3, %v2191_v35  ;;  %v2204_v5 = vsub.f32 %v4947_v50, %v2203_v53 }
 0x23a   :  { %4177 = vmatprep.subr.mxu1 %v5503_v19  ;;  %v2187_v55 = vand.u32 4294901760, %v2186_v58 }
 0x23b   :  { %4178 = vmatpush3.msra.mxu1 %v5504_v63  ;;  %v2193_v27 = vand.u32 4294901760, %v2192_v48  ;;  %v2205_v0 = vand.u32 4294901760, %v2204_v5 }
 0x23c   :  { %4179 = vmatprep.subr.mxu1 %v5505_v11 }
 0x23d   :  { %4180 = vmatpush3.msra.mxu1 %v5506_v25 }
 0x23e   :  { %4181 = vmatprep.subr.mxu1 %v5507_v17 }
 0x23f   :  { %4182 = vmatpush3.msra.mxu1 %v5508_v1 }
 0x240   :  { %4183 = vmatprep.subr.mxu1 %v5509_v28 }
 0x241   :  { %4184 = vmatpush3.msra.mxu1 %v5510_v26 }
 0x242   :  { %4185 = vmatprep.subr.mxu1 %v5511_v8 }
 0x243   :  { %4186 = vmatpush3.msra.mxu1 %v5512_v31 }
 0x244   :  { %4187 = vmatprep.subr.mxu1 %v5513_v6 }
 0x245   :  { %4188 = vmatpush3.msra.mxu1 %v5514_v32 }
 0x246   :  { %4189 = vmatprep.subr.mxu1 %v5515_v34 }
 0x247   :  { %4190 = vmatpush3.msra.mxu1 %v5516_v4 }
 0x248   :  { %4191 = vmatprep.subr.mxu1 %v5517_v39 }
 0x249   :  { %4192 = vmatpush3.msra.mxu1 %v5518_v37 }
 0x24a   :  { %4193 = vmatprep.subr.mxu1 %v5519_v42 }
 0x24b   :  { %4194 = vmatpush3.msra.mxu1 %v5520_v10 }
 0x24c   :  { %2042 = vmatmul.mubr.f32.vlgmr.msra.gmra.mxu1 %v4758_v9  ;;  %v4943_v9 = vsub.f32 %v2068_v47, %v4929_v54  ;;  %2188 = vmatprep.subr.mxu1 %v2187_v55 }
 0x24d   :  { %2239 = vmatprep.mubr.f32.mxu1 %v5498_v30  ;;  %2194 = vmatpush1.msra.mxu1 %v2193_v27 }
 0x24e   :  { %v2197_v41 = vand.u32 4294901760, %v4943_v9 }
 0x250   :  { %v2198_v45 = vsub.f32 %v4943_v9, %v2197_v41 }
 0x252   :  { %v2199_v22 = vand.u32 4294901760, %v2198_v45 }
 0x254   :  { %2200 = vmatprep.subr.mxu1 %v2199_v22 }
 0x255   :  { %2206 = vmatpush1.msra.mxu1 %v2205_v0 }
 0x256   :  { %2357 = vmatprep.subr.mxu1 %v4925_v49 }
 0x2a6   :  { %v4090_v13 = vpop.f32.mrf.mxu0 }
 0x2a8   :  { %v4091_v33 = vpop.f32.mrf.mxu0 }
 0x2a9   :  { %v4092_v21 = vadd.f32 %v4091_v33, %v4090_v13 }
 0x2ac   :  { %v4020_v12 = vpop.f32.mrf.mxu1 }
 0x2ae   :  { %v4021_v56 = vpop.f32.mrf.mxu1 }
 0x2af   :  { %v4022_v40 = vadd.f32 %v4021_v56, %v4020_v12 }
 0x2c7   :  { %v4160_v44 = vpop.f32.mrf.mxu0 }
 0x2c9   :  { %v4161_v59 = vpop.f32.mrf.mxu0 }
 0x2ca   :  { %v4162_v29 = vadd.f32 %v4161_v59, %v4160_v44 }
 0x2cc   :  { %v4055_v15 = vpop.f32.mrf.mxu1 }
 0x2ce   :  { %v4056_v46 = vpop.f32.mrf.mxu1 }
 0x2cf   :  { %v4057_v52 = vadd.f32 %v4056_v46, %v4055_v15 }
 0x2d1   :  { %v1526_v62 = vadd.f32 %v4057_v52, %v4022_v40 }
 0x2d3   :  { %v1664_v18 = vadd.f32 %v4092_v21, %v1526_v62 }
 0x2ec   :  { %v4125_v24 = vpop.f32.mrf.mxu1 }
 0x2ee   :  { %v4126_v7 = vpop.f32.mrf.mxu1 }
 0x2ef   :  { %v4127_v14 = vadd.f32 %v4126_v7, %v4125_v24 }
 0x2f1   :  { %v1772_v20 = vadd.f32 %v4127_v14, %v1664_v18 }
 0x2f3   :  { %v1940_v23 = vadd.f32 %v4162_v29, %v1772_v20 }
 0x30c   :  { %v4195_v36 = vpop.f32.mrf.mxu1 }
 0x30e   :  { %v4196_v16 = vpop.f32.mrf.mxu1 }
 0x30f   :  { %v4197_v19 = vadd.f32 %v4196_v16, %v4195_v36 }
 0x311   :  { %v2044_v63 = vadd.f32 %v4197_v19, %v1940_v23 }
 0x313   :  { %v2048_v11 = vsel %vm2047_vm15, %v2044_v63, -inf }
 0x314   :  { %v2049_v25 = vrot.slane %v2048_v11, 4 }
 0x316   :  { %v2050_v17 = vmax.f32 %v2048_v11, %v2049_v25 }
 0x318   :  { %v2051_v1 = vrot.slane %v2050_v17, 2 }
 0x31a   :  { %v2052_v28 = vmax.f32 %v2050_v17, %v2051_v1 }
 0x31c   :  { %v2053_v26 = vrot.slane %v2052_v28, 1 }
 0x31e   :  { %v2054_v8 = vmax.f32 %v2052_v28, %v2053_v26 }
 0x320   :  { %v2055_v31 = vsub.f32 %v2044_v63, %v2054_v8 }
 0x322   :  { %v2056_v6 = vmul.f32 1.442695, %v2055_v31 }
 0x324   :  { %4222 = vpow2.f32 %v2056_v6 }
 0x331   :  { %v4223_v32 = vpop.eup %4222 }
 0x332   :  { %v2058_v34 = vsel %vm2047_vm15, %v4223_v32, 0.0 }
 0x333   :  { %v2059_v4 = vrot.slane %v2058_v34, 4 }
 0x335   :  { %v2060_v39 = vadd.f32 %v2059_v4, %v2058_v34 }
 0x337   :  { %v2061_v37 = vrot.slane %v2060_v39, 2 }
 0x339   :  { %v2062_v42 = vadd.f32 %v2061_v37, %v2060_v39 }
 0x33b   :  { %v2063_v10 = vrot.slane %v2062_v42, 1 }
 0x33d   :  { %v2064_v38 = vadd.f32 %v2063_v10, %v2062_v42 }
 0x33f   :  { %4224 = vrcp.f32 %v2064_v38 }
 0x34c   :  { %v4225_v43 = vpop.eup %4224 }
 0x34d   :  { %v2066_v47 = vmul.f32 %v4225_v43, %v4223_v32 }
 0x34f   :  { %v2073_v57 = vsel %vm2071_vm0, %v2066_v47, 0 }
 0x350   :  { %v2144_v58 = vand.u32 4294901760, %v2073_v57 }
 0x352   :  { %v2145_v48 = vsub.f32 %v2073_v57, %v2144_v58  ;;  %2241 = vmatmul.mubr.f32.vlgmr.msra.gmra.mxu1 %v2144_v58 }
 0x353   :  { %2359 = vmatpush1.msra.mxu1 %v4927_v51  ;;  %2396 = vmatprep.mubr.f32.mxu1 %v5498_v30 }
 0x354   :  { %2361 = vmatprep.subr.mxu1 %v4929_v54  ;;  %v2146_v45 = vand.u32 4294901760, %v2145_v48 }
 0x355   :  { %2363 = vmatpush1.msra.mxu1 %v4934_v60 }
 0x356   :  { %2400 = vmatmul.mubr.f32.vlgmr.msra.gmra.mxu1 %v2146_v45  ;;  %2519 = vmatprep.subr.mxu1 %v4925_v49  ;;  %v2147_v5 = vsub.f32 %v2145_v48, %v2146_v45 }
 0x357   :  { %2521 = vmatpush1.msra.mxu1 %v4927_v51  ;;  %2558 = vmatprep.mubr.f32.mxu1 %v5498_v30  ;;  %v2566_v51 = vld [vmem:[%s5426_s4] sm:$0xff] }
 0x358   :  { %2523 = vmatprep.subr.mxu1 %v4929_v54  ;;  %v2148_v55 = vand.u32 4294901760, %v2147_v5 }
 0x359   :  { %2525 = vmatpush1.msra.mxu1 %v4934_v60  ;;  %v2571_v60 = vsel %vm2569_vm1, %v2566_v51, 0 }
 0x35a   :  { %2149 = vmatmul.mubr.f32.vlgmr.msra.gmra.mxu0 %v2148_v55  ;;  %2560 = vmatmul.mubr.f32.vlgmr.msra.gmra.mxu1 %v2144_v58 }
 0x35b   :  { %2280 = vmatpush1.msra.mxu0 %v4940_v3  ;;  %2319 = vmatprep.mubr.f32.mxu0 %v5498_v30  ;;  %v5001_v3 = vand.u32 4294901760, %v2571_v60 }
 0x35c   :  { %2283 = vmatprep.subr.mxu0 %v4943_v9  ;;  %2760 = vmatprep.mubr.f32.mxu1 %v5498_v30 }
 0x35d   :  { %2286 = vmatpush1.msra.mxu0 %v4947_v50  ;;  %v5008_v27 = vsub.f32 %v2571_v60, %v5001_v3 }
 0x35e   :  { %2322 = vmatmul.mubr.f32.vlgmr.msra.gmra.mxu0 %v2145_v48  ;;  %2437 = vmatprep.subr.mxu0 %v2185_v2  ;;  %v2574_v2 = vsel %vm2569_vm1, %v2567_v61, 0 }
 0x35f   :  { %2441 = vmatpush1.msra.mxu0 %v2191_v35  ;;  %2482 = vmatprep.mubr.f32.mxu0 %v5498_v30  ;;  %v5010_v12 = vand.u32 4294901760, %v2574_v2  ;;  %v2655_v40 = vand.u32 4294901760, %v5008_v27 }
 0x360   :  { %2445 = vmatprep.subr.mxu0 %v2197_v41  ;;  %v2568_v41 = vld [vmem:[%s5426_s4 + $0x10] sm:$0xff] }
 0x361   :  { %2449 = vmatpush1.msra.mxu0 %v2203_v53  ;;  %v2577_v46 = vsel %vm2569_vm1, %v2568_v41, 0  ;;  %v5015_v62 = vsub.f32 %v2574_v2, %v5010_v12  ;;  %v2656_v36 = vsub.f32 %v5008_v27, %v2655_v40 }
 0x362   :  { %2484 = vmatmul.mubr.f32.vlgmr.msra.gmra.mxu0 %v2144_v58  ;;  %v5017_v44 = vand.u32 4294901760, %v2577_v46 }
 0x363   :  { %2652 = vmatprep.mubr.f32.mxu0 %v5498_v30  ;;  %v2666_v16 = vand.u32 4294901760, %v5015_v62  ;;  %v2657_v17 = vand.u32 4294901760, %v2656_v36 }
 0x364   :  { %v2676_v23 = vsub.f32 %v2577_v46, %v5017_v44 }
 0x365   :  { %v2667_v26 = vsub.f32 %v5015_v62, %v2666_v16 }
 0x366   :  { %v2677_v8 = vand.u32 4294901760, %v2676_v23 }
 0x367   :  { %v2668_v34 = vand.u32 4294901760, %v2667_v26 }
 0x368   :  { %v2678_v4 = vsub.f32 %v2676_v23, %v2677_v8 }
 0x36a   :  { %v2679_v10 = vand.u32 4294901760, %v2678_v4 }
 0x412   :  { %v2242_v49 = vpop.f32.mrf.mxu1 }
 0x414   :  { %v2244_v54 = vpop.f32.mrf.mxu1 }
 0x416   :  { %v2401_v9 = vpop.f32.mrf.mxu1 }
 0x418   :  { %v2403_v22 = vpop.f32.mrf.mxu1 }
 0x41a   :  { %v2150_v50 = vpop.f32.mrf.mxu0  ;;  %v2561_v33 = vpop.f32.mrf.mxu1 }
 0x41b   :  { %v2243_v53 = vadd.f32 %v2242_v49, %v2150_v50 }
 0x41c   :  { %v2152_v35 = vpop.f32.mrf.mxu0  ;;  %v2563_v29 = vpop.f32.mrf.mxu1 }
 0x41d   :  { %v2245_v56 = vadd.f32 %v2244_v54, %v2152_v35 }
 0x41e   :  { %v2323_v0 = vpop.f32.mrf.mxu0 }
 0x41f   :  { %v2324_v15 = vadd.f32 %v2323_v0, %v2243_v53 }
 0x420   :  { %v2325_v13 = vpop.f32.mrf.mxu0 }
 0x421   :  { %v2326_v24 = vadd.f32 %v2325_v13, %v2245_v56  ;;  %v2402_v52 = vadd.f32 %v2401_v9, %v2324_v15 }
 0x422   :  { %v2485_v7 = vpop.f32.mrf.mxu0 }
 0x423   :  { %v2486_v21 = vadd.f32 %v2485_v7, %v2402_v52  ;;  %v2404_v14 = vadd.f32 %v2403_v22, %v2326_v24 }
 0x424   :  { %v2487_v18 = vpop.f32.mrf.mxu0 }
 0x425   :  { %v2562_v59 = vadd.f32 %v2561_v33, %v2486_v21  ;;  %v2488_v20 = vadd.f32 %v2487_v18, %v2404_v14 }
 0x427   :  { %v2581_v19 = vsel %vm2579_vm2, %v2562_v59, 0  ;;  %v2564_v63 = vadd.f32 %v2563_v29, %v2488_v20  ;;  %v4226_v20 = vld [vmem:[%s5422_s1] sm:$0xff] }
 0x428   :  { %v2618_v11 = vand.u32 4294901760, %v2581_v19 }
 0x429   :  { %v2584_v25 = vsel %vm2579_vm2, %v2564_v63, 0 }
 0x42a   :  { %v2723_v1 = vsub.f32 %v2581_v19, %v2618_v11  ;;  %v2616_v28 = vand.u32 4294901760, %v2584_v25  ;;  %v4227_v19 = vld [vmem:[%s5422_s1 + $0x8] sm:$0xff] }
 0x42c   :  { %2617 = vmatprep.subr.mxu0 %v2616_v28  ;;  %v2717_v31 = vsub.f32 %v2584_v25, %v2616_v28  ;;  %v2724_v6 = vand.u32 4294901760, %v2723_v1 }
 0x42d   :  { %2619 = vmatpush1.msra.mxu0 %v2618_v11 }
 0x42e   :  { %2658 = vmatmul.mubr.f32.vlgmr.msra.gmra.mxu0 %v2657_v17  ;;  %2814 = vmatprep.subr.mxu0 %v2717_v31  ;;  %v2718_v32 = vand.u32 4294901760, %v2717_v31  ;;  %v2725_v39 = vsub.f32 %v2723_v1, %v2724_v6 }
 0x42f   :  { %2817 = vmatpush1.msra.mxu0 %v2723_v1  ;;  %2663 = vmatprep.mubr.f32.mxu0 %v5498_v30  ;;  %v4228_v1 = vld [vmem:[%s5422_s1 + $0x10] sm:$0xff] }
 0x430   :  { %3002 = vmatprep.subr.mxu0 %v2718_v32  ;;  %v2719_v37 = vsub.f32 %v2717_v31, %v2718_v32  ;;  %v2726_v38 = vand.u32 4294901760, %v2725_v39 }
 0x432   :  { %2669 = vmatmul.mubr.f32.gmra.mxu0 %v2668_v34  ;;  %v2720_v42 = vand.u32 4294901760, %v2719_v37  ;;  %v4229_v37 = vld [vmem:[%s5422_s1 + $0x18] sm:$0xff] }
 0x433   :  { %2674 = vmatprep.mubr.f32.mxu0 %v5498_v30 }
 0x434   :  { %2721 = vmatprep.subr.mxu1 %v2720_v42 }
 0x435   :  { %2727 = vmatpush1.msra.mxu1 %v2726_v38 }
 0x436   :  { %2680 = vmatmul.mubr.f32.gmra.mxu0 %v2679_v10  ;;  %2762 = vmatmul.mubr.f32.vlgmr.msra.gmra.mxu1 %v5001_v3 }
 0x437   :  { %2906 = vmatprep.subr.mxu1 %v2616_v28  ;;  %2767 = vmatprep.mubr.f32.mxu1 %v5498_v30 }
 0x438   :  { %2908 = vmatpush1.msra.mxu1 %v2618_v11  ;;  %2850 = vmatprep.mubr.f32.mxu0 %v5498_v30 }
 0x439   :  { %3092 = vmatprep.subr.mxu1 %v2616_v28 }
 0x43a   :  { %2769 = vmatmul.mubr.f32.gmra.mxu1 %v5010_v12  ;;  %2853 = vmatmul.mubr.f32.vlgmr.msra.gmra.mxu0 %v5008_v27 }
 0x43b   :  { %3006 = vmatpush1.msra.mxu0 %v2724_v6  ;;  %2774 = vmatprep.mubr.f32.mxu1 %v5498_v30 }
 0x43c   :  { %2858 = vmatprep.mubr.f32.mxu0 %v5498_v30 }
 0x43e   :  { %2776 = vmatmul.mubr.f32.gmra.mxu1 %v5017_v44  ;;  %2861 = vmatmul.mubr.f32.gmra.mxu0 %v5015_v62 }
 0x43f   :  { %2866 = vmatprep.mubr.f32.mxu0 %v5498_v30  ;;  %2941 = vmatprep.mubr.f32.mxu1 %v5498_v30 }
 0x442   :  { %2869 = vmatmul.mubr.f32.gmra.mxu0 %v2676_v23  ;;  %2945 = vmatmul.mubr.f32.vlgmr.msra.gmra.mxu1 %v2655_v40 }
 0x443   :  { %3094 = vmatpush1.msra.mxu1 %v2618_v11  ;;  %2950 = vmatprep.mubr.f32.mxu1 %v5498_v30 }
 0x444   :  { %3039 = vmatprep.mubr.f32.mxu0 %v5498_v30 }
 0x446   :  { %2954 = vmatmul.mubr.f32.gmra.mxu1 %v2666_v16  ;;  %3041 = vmatmul.mubr.f32.vlgmr.msra.gmra.mxu0 %v5001_v3 }
 0x447   :  { %2959 = vmatprep.mubr.f32.mxu1 %v5498_v30  ;;  %3046 = vmatprep.mubr.f32.mxu0 %v5498_v30 }
 0x44a   :  { %2963 = vmatmul.mubr.f32.gmra.mxu1 %v2677_v8  ;;  %3048 = vmatmul.mubr.f32.gmra.mxu0 %v5010_v12 }
 0x44b   :  { %3053 = vmatprep.mubr.f32.mxu0 %v5498_v30  ;;  %3127 = vmatprep.mubr.f32.mxu1 %v5498_v30 }
 0x44e   :  { %3055 = vmatmul.mubr.f32.gmra.mxu0 %v5017_v44  ;;  %3129 = vmatmul.mubr.f32.vlgmr.msra.gmra.mxu1 %v5001_v3 }
 0x44f   :  { %3134 = vmatprep.mubr.f32.mxu1 %v5498_v30 }
 0x452   :  { %3136 = vmatmul.mubr.f32.gmra.mxu1 %v5010_v12 }
 0x453   :  { %3141 = vmatprep.mubr.f32.mxu1 %v5498_v30 }
 0x456   :  { %3143 = vmatmul.mubr.f32.gmra.mxu1 %v5017_v44 }
 0x4ee   :  { %v2659_v43 = vpop.f32.mrf.mxu0 }
 0x4f0   :  { %v2661_v47 = vpop.f32.mrf.mxu0 }
 0x4f2   :  { %v2670_v57 = vpop.f32.mrf.mxu0 }
 0x4f4   :  { %v2672_v58 = vpop.f32.mrf.mxu0 }
 0x4f6   :  { %v5050_v48 = vpop.f32.mrf.mxu0  ;;  %v2763_v45 = vpop.f32.mrf.mxu1 }
 0x4f7   :  { %v2764_v22 = vadd.f32 %v2763_v45, %v2659_v43  ;;  %v4230_v45 = vld [vmem:[%s5422_s1 + $0x20] sm:$0xff] }
 0x4f8   :  { %v5052_v5 = vpop.f32.mrf.mxu0  ;;  %v2765_v55 = vpop.f32.mrf.mxu1 }
 0x4f9   :  { %v2766_v56 = vadd.f32 %v2765_v55, %v2661_v47 }
 0x4fa   :  { %v2770_v49 = vpop.f32.mrf.mxu1  ;;  %v2854_v51 = vpop.f32.mrf.mxu0 }
 0x4fb   :  { %v2855_v15 = vadd.f32 %v2854_v51, %v2764_v22  ;;  %v2771_v44 = vadd.f32 %v2770_v49, %v2670_v57 }
 0x4fc   :  { %v2772_v54 = vpop.f32.mrf.mxu1  ;;  %v2856_v60 = vpop.f32.mrf.mxu0 }
 0x4fd   :  { %v2857_v13 = vadd.f32 %v2856_v60, %v2766_v56  ;;  %v2773_v26 = vadd.f32 %v2772_v54, %v2672_v58 }
 0x4fe   :  { %v5054_v61 = vpop.f32.mrf.mxu1  ;;  %v2862_v3 = vpop.f32.mrf.mxu0 }
 0x4ff   :  { %v2863_v59 = vadd.f32 %v2862_v3, %v2771_v44  ;;  %v2778_v39 = vadd.f32 %v5054_v61, %v5050_v48  ;;  %v4231_v3 = vld [vmem:[%s5422_s1 + $0x28] sm:$0xff]  ;;  %s4240_s1 = smov 121  }
 0x500   :  { %v5056_v9 = vpop.f32.mrf.mxu1  ;;  %v2864_v50 = vpop.f32.mrf.mxu0 }
 0x501   :  { %v2865_v8 = vadd.f32 %v2864_v50, %v2773_v26  ;;  %v2780_v48 = vadd.f32 %v5056_v9, %v5052_v5  ;;  %v5180_v50 = vld [vmem:[%s5427_s8] sm:$0xff] }
 0x502   :  { %v5058_v2 = vpop.f32.mrf.mxu0  ;;  %v2946_v35 = vpop.f32.mrf.mxu1 }
 0x503   :  { %v2947_v24 = vadd.f32 %v2946_v35, %v2855_v15  ;;  %v2871_v10 = vadd.f32 %v5058_v2, %v2778_v39  ;;  %v3905_v2 = vcombine.high %v5180_v50, %v5180_v50 }
 0x504   :  { %v5060_v41 = vpop.f32.mrf.mxu0  ;;  %v2948_v53 = vpop.f32.mrf.mxu1 }
 0x505   :  { %v2949_v33 = vadd.f32 %v2948_v53, %v2857_v13  ;;  %v2873_v49 = vadd.f32 %v5060_v41, %v2780_v48  ;;  %3934 = vmatprep.mubr.msk.bf16.mxu0 %vm3823_vm3, %v3905_v2 }
 0x506   :  { %v2955_v27 = vpop.f32.mrf.mxu1  ;;  %v3042_v0 = vpop.f32.mrf.mxu0 }
 0x507   :  { %v3043_v7 = vadd.f32 %v3042_v0, %v2947_v24  ;;  %v2956_v23 = vadd.f32 %v2955_v27, %v2863_v59 }
 0x508   :  { %v2957_v12 = vpop.f32.mrf.mxu1  ;;  %v3044_v52 = vpop.f32.mrf.mxu0 }
 0x509   :  { %v3045_v21 = vadd.f32 %v3044_v52, %v2949_v33  ;;  %v2958_v6 = vadd.f32 %v2957_v12, %v2865_v8  ;;  %v3171_v12 = vlaneseq }
 0x50a   :  { %v2964_v46 = vpop.f32.mrf.mxu1  ;;  %v3049_v16 = vpop.f32.mrf.mxu0 }
 0x50b   :  { %v3050_v25 = vadd.f32 %v3049_v16, %v2956_v23  ;;  %v2965_v43 = vadd.f32 %v2964_v46, %v2871_v10  ;;  %v5200_v46 = vshrl.u32 %v3171_v12, 7 }
 0x50c   :  { %v5062_v40 = vpop.f32.mrf.mxu1  ;;  %v3051_v31 = vpop.f32.mrf.mxu0 }
 0x50d   :  { %v3052_v34 = vadd.f32 %v3051_v31, %v2958_v6  ;;  %v2967_v54 = vadd.f32 %v5062_v40, %v2873_v49  ;;  %v3429_v52 = vsub.s32 5, %v5200_v46  ;;  %v5207_v40 = vand.u32 127, %v3171_v12 }
 0x50e   :  { %v3130_v62 = vpop.f32.mrf.mxu1  ;;  %v3056_v38 = vpop.f32.mrf.mxu0  ;;  %v3294_v10 = vsub.s32 2, %v5200_v46  ;;  %vm3634_vm8 = vcmp.eq.s32.totalorder %v5200_v46, 0 }
 0x50f   :  { %v3131_v14 = vadd.f32 %v3130_v62, %v3043_v7  ;;  %v3057_v57 = vadd.f32 %v3056_v38, %v2965_v43  ;;  %v5214_v7 = vld [vmem:[%s5428_s7] sm:$0xff]  ;;  %v5219_v62 = vld [vmem:[%s5428_s7 + $0x8] sm:$0xff]  ;;  %vm3420_vm4 = vcmp.lt.s32.totalorder %v5207_v40, 127  ;;  %vm3341_vm5 = vcmp.lt.s32.totalorder %v5207_v40, 1 }
 0x510   :  { %v3132_v18 = vpop.f32.mrf.mxu1  ;;  %v3058_v51 = vpop.f32.mrf.mxu0  ;;  %vm3285_vm6 = vcmp.lt.s32.totalorder %v5207_v40, 7  ;;  %vm3229_vm7 = vcmp.lt.s32.totalorder %v5207_v40, 8  ;;  %vm3173_vm9 = vcmp.lt.s32.totalorder %v5207_v40, 9  ;;  %vm3588_vm10 = vcmp.lt.s32.totalorder %v5207_v40, 119 }
 0x511   :  { %v5067_v36 = vmul.f32 %v4226_v20, %v3131_v14  ;;  %v3133_v29 = vadd.f32 %v3132_v18, %v3045_v21  ;;  %v3059_v60 = vadd.f32 %v3058_v51, %v2967_v54  ;;  %v5225_v21 = vrot.slane %v5214_v7, %v3429_v52 }
 0x512   :  { %v3137_v11 = vpop.f32.mrf.mxu1  ;;  %v5228_v14 = vrot.slane %v5219_v62, %v3429_v52  ;;  %vm3532_vm11 = vcmp.lt.s32.totalorder %v5207_v40, 120  ;;  %vm3476_vm12 = vcmp.lt.s32.totalorder %v5207_v40, 121 }
 0x513   :  { %v5072_v63 = vmul.f32 %v4227_v19, %v3133_v29  ;;  %3408 = vrot.lane.b32.xlu0 %v5067_v36, %s4233_s14  ;;  %v3138_v17 = vadd.f32 %v3137_v11, %v3050_v25 }
 0x514   :  { %v3139_v32 = vpop.f32.mrf.mxu1 }
 0x515   :  { %3335 = vrot.lane.b32.xlu1 %v5072_v63, %s4234_s0  ;;  %v5085_v28 = vmul.f32 %v4228_v1, %v3138_v17  ;;  %v3140_v4 = vadd.f32 %v3139_v32, %v3052_v34 }
 0x516   :  { %v3144_v47 = vpop.f32.mrf.mxu1 }
 0x517   :  { %3329 = vrot.lane.b32.xlu0 %v5067_v36, %s4234_s0  ;;  %v5108_v42 = vmul.f32 %v4229_v37, %v3140_v4  ;;  %v3145_v58 = vadd.f32 %v3144_v47, %v3057_v57  ;;  %v3974_v8 = vpack.c.bf16 %v5085_v28, %v5067_v36  ;;  %v3350_v37 = vsub.s32 3, %v5200_v46 }
 0x518   :  { %v3146_v5 = vpop.f32.mrf.mxu1 }
 0x519   :  { %3223 = vrot.lane.b32.xlu1 %v5072_v63, %s4235_s15  ;;  %v5128_v55 = vmul.f32 %v4230_v45, %v3145_v58  ;;  %v3147_v61 = vadd.f32 %v3146_v5, %v3059_v60  ;;  %v3975_v1 = vpack.c.bf16 %v5108_v42, %v5072_v63  ;;  %v3351_v38 = vrot.slane %v5214_v7, %v3350_v37 }
 0x51a   :  { %v3355_v43 = vrot.slane %v5219_v62, %v3350_v37  ;;  %v3238_v60 = vsub.s32 1, %v5200_v46 }
 0x51b   :  { %3273 = vrot.lane.b32.xlu0 %v5067_v36, %s4236_s17  ;;  %v5146_v9 = vmul.f32 %v4231_v3, %v3147_v61  ;;  %v3295_v61 = vrot.slane %v5214_v7, %v3294_v10  ;;  %v3299_v3 = vrot.slane %v5219_v62, %v3294_v10 }
 0x51d   :  { %3331 = vrot.lane.b32.xlu1 %v5085_v28, %s4234_s0 }
 0x51f   :  { %3217 = vrot.lane.b32.xlu0 %v5067_v36, %s4235_s15 }
 0x521   :  { %3275 = vrot.lane.b32.xlu1 %v5085_v28, %s4236_s17 }
 0x523   :  { %3159 = vrot.lane.b32.xlu0 %v5067_v36, %s4237_s18 }
 0x525   :  { %3161 = vrot.lane.b32.xlu1 %v5085_v28, %s4237_s18 }
 0x527   :  { %3576 = vrot.lane.b32.xlu0 %v5067_v36, %s4238_s19 }
 0x529   :  { %3578 = vrot.lane.b32.xlu1 %v5085_v28, %s4238_s19 }
 0x52b   :  { %3414 = vrot.lane.b32.xlu0 %v5072_v63, %s4233_s14 }
 0x52d   :  { %3281 = vrot.lane.b32.xlu1 %v5108_v42, %s4236_s17 }
 0x52f   :  { %3279 = vrot.lane.b32.xlu0 %v5072_v63, %s4236_s17 }
 0x531   :  { %3167 = vrot.lane.b32.xlu1 %v5108_v42, %s4237_s18 }
 0x533   :  { %3165 = vrot.lane.b32.xlu0 %v5072_v63, %s4237_s18 }
 0x535   :  { %3584 = vrot.lane.b32.xlu1 %v5108_v42, %s4238_s19 }
 0x537   :  { %3582 = vrot.lane.b32.xlu0 %v5072_v63, %s4238_s19 }
 0x539   :  { %3333 = vrot.lane.b32.xlu1 %v5128_v55, %s4234_s0 }
 0x53b   :  { %3219 = vrot.lane.b32.xlu0 %v5085_v28, %s4235_s15 }
 0x53d   :  { %3221 = vrot.lane.b32.xlu1 %v5128_v55, %s4235_s15 }
 0x53f   :  { %3337 = vrot.lane.b32.xlu0 %v5108_v42, %s4234_s0 }
 0x541   :  { %3524 = vrot.lane.b32.xlu1 %v5128_v55, %s4239_s23 }
 0x543   :  { %3225 = vrot.lane.b32.xlu0 %v5108_v42, %s4235_s15 }
 0x545   :  { %3339 = vrot.lane.b32.xlu1 %v5146_v9, %s4234_s0 }
 0x547   :  { %3277 = vrot.lane.b32.xlu0 %v5128_v55, %s4236_s17 }
 0x549   :  { %3283 = vrot.lane.b32.xlu1 %v5146_v9, %s4236_s17 }
 0x54b   :  { %3522 = vrot.lane.b32.xlu0 %v5085_v28, %s4239_s23 }
 0x54d   :  { %3526 = vrot.lane.b32.xlu1 %v5072_v63, %s4239_s23 }
 0x54f   :  { %3528 = vrot.lane.b32.xlu0 %v5108_v42, %s4239_s23 }
 0x551   :  { %3227 = vrot.lane.b32.xlu1 %v5146_v9, %s4235_s15 }
 0x553   :  { %3163 = vrot.lane.b32.xlu0 %v5128_v55, %s4237_s18 }
 0x555   :  { %3169 = vrot.lane.b32.xlu1 %v5146_v9, %s4237_s18 }
 0x557   :  { %3580 = vrot.lane.b32.xlu0 %v5128_v55, %s4238_s19 }
 0x559   :  { %3586 = vrot.lane.b32.xlu1 %v5146_v9, %s4238_s19 }
 0x55b   :  { %3520 = vrot.lane.b32.xlu0 %v5067_v36, %s4239_s23 }
 0x55d   :  { %3466 = vrot.lane.b32.xlu1 %v5085_v28, %s4240_s1 }
 0x55f   :  { %3468 = vrot.lane.b32.xlu0 %v5128_v55, %s4240_s1 }
 0x561   :  { %3472 = vrot.lane.b32.xlu1 %v5108_v42, %s4240_s1 }
 0x563   :  { %3464 = vrot.lane.b32.xlu0 %v5067_v36, %s4240_s1 }
 0x565   :  { %3530 = vrot.lane.b32.xlu1 %v5146_v9, %s4239_s23 }
 0x567   :  { %3470 = vrot.lane.b32.xlu0 %v5072_v63, %s4240_s1 }
 0x569   :  { %3474 = vrot.lane.b32.xlu1 %v5146_v9, %s4240_s1 }
 0x56b   :  { %3410 = vrot.lane.b32.xlu0 %v5085_v28, %s4233_s14 }
 0x56d   :  { %3412 = vrot.lane.b32.xlu1 %v5128_v55, %s4233_s14 }
 0x56f   :  { %3416 = vrot.lane.b32.xlu0 %v5108_v42, %s4233_s14 }
 0x571   :  { %3418 = vrot.lane.b32.xlu1 %v5146_v9, %s4233_s14 }
 0x585   :  { %v3409_v35 = vpop.permute.xlu0 %3408 }
 0x587   :  { %v3336_v41 = vpop.permute.xlu1 %3335 }
 0x589   :  { %v3330_v53 = vpop.permute.xlu0 %3329 }
 0x58a   :  { %v3342_v57 = vsel %vm3341_vm5, %v3330_v53, %v3336_v41  ;;  %v3345_v58 = vsel %vm3341_vm5, %v3336_v41, %v3330_v53 }
 0x58b   :  { %v5192_v27 = vpop.permute.xlu1 %3223  ;;  %v3356_v2 = vmul.f32 %v3351_v38, %v3345_v58 }
 0x58d   :  { %v5194_v22 = vpop.permute.xlu0 %3273 }
 0x58f   :  { %v3332_v0 = vpop.permute.xlu1 %3331 }
 0x591   :  { %v5196_v56 = vpop.permute.xlu0 %3217 }
 0x593   :  { %v5198_v15 = vpop.permute.xlu1 %3275 }
 0x595   :  { %v5202_v13 = vpop.permute.xlu0 %3159 }
 0x597   :  { %v5204_v24 = vpop.permute.xlu1 %3161 }
 0x599   :  { %v5209_v33 = vpop.permute.xlu0 %3576 }
 0x59b   :  { %v5221_v44 = vpop.permute.xlu1 %3578 }
 0x59d   :  { %v3415_v18 = vpop.permute.xlu0 %3414 }
 0x59e   :  { %v3421_v59 = vsel %vm3420_vm4, %v3409_v35, %v3415_v18  ;;  %v3424_v20 = vsel %vm3420_vm4, %v3415_v18, %v3409_v35 }
 0x59f   :  { %v3435_v29 = vmul.f32 %v5225_v21, %v3421_v59  ;;  %v3436_v16 = vmul.f32 %v5228_v14, %v3424_v20  ;;  %v3282_v23 = vpop.permute.xlu1 %3281 }
 0x5a0   :  { %v3287_v12 = vsel %vm3285_vm6, %v5198_v15, %v3282_v23 }
 0x5a1   :  { %v3976_v19 = vpack.c.bf16 %v3435_v29, %v5128_v55  ;;  %v3280_v11 = vpop.permute.xlu0 %3279  ;;  %v3977_v25 = vpack.c.bf16 %v3436_v16, %v5146_v9 }
 0x5a2   :  { %v3286_v9 = vsel %vm3285_vm6, %v5194_v22, %v3280_v11  ;;  %v3289_v59 = vsel %vm3285_vm6, %v3280_v11, %v5194_v22  ;;  %v3239_v11 = vrot.slane %v5214_v7, %v3238_v60 }
 0x5a3   :  { %v5238_v17 = vpop.permute.xlu1 %3167  ;;  %3827 = vmatprep.subr.bf16.mxu0 %v3977_v25  ;;  %v3301_v20 = vmul.f32 %v3299_v3, %v3286_v9  ;;  %v4241_v25 = vmov 839922192   ;;  %v3300_v22 = vmul.f32 %v3295_v61, %v3289_v59 }
 0x5a4   :  { %3828 = vmatpush1.bf16.msra.mxu0 %v3976_v19 }
 0x5a5   :  { %v5242_v26 = vpop.permute.xlu0 %3165  ;;  %3829 = vmatprep.subr.bf16.mxu0 %v3975_v1  ;;  %v3640_v1 = vunpack.c.l.s4 %v4241_v25  ;;  %v3178_v25 = vsel %vm3173_vm9, %v5238_v17, %v5204_v24 }
 0x5a7   :  { %v5246_v31 = vpop.permute.xlu1 %3584 }
 0x5a8   :  { %3830 = vmatpush1.bf16.msra.mxu0 %v3974_v8  ;;  %v3290_v8 = vsel %vm3285_vm6, %v3282_v23, %v5198_v15  ;;  %v3182_v15 = vsub.s32 0, %v5200_v46 }
 0x5a9   :  { %v5248_v6 = vpop.permute.xlu0 %3582 }
 0x5ab   :  { %v3334_v32 = vpop.permute.xlu1 %3333 }
 0x5ad   :  { %v3220_v34 = vpop.permute.xlu0 %3219 }
 0x5af   :  { %v5250_v4 = vpop.permute.xlu1 %3221 }
 0x5b1   :  { %v3338_v39 = vpop.permute.xlu0 %3337 }
 0x5b2   :  { %v3343_v36 = vsel %vm3341_vm5, %v3332_v0, %v3338_v39  ;;  %v3346_v28 = vsel %vm3341_vm5, %v3338_v39, %v3332_v0  ;;  %v3357_v0 = vmul.f32 %v3355_v43, %v3342_v57  ;;  %v3230_v57 = vsel %vm3229_vm7, %v5196_v56, %v5192_v27 }
 0x5b3   :  { %v5253_v63 = vpop.permute.xlu1 %3524  ;;  %v3358_v55 = vmul.f32 %v3351_v38, %v3346_v28  ;;  %v3359_v49 = vmul.f32 %v3355_v43, %v3343_v36  ;;  %v3243_v36 = vrot.slane %v5219_v62, %v3238_v60 }
 0x5b5   :  { %v3226_v42 = vpop.permute.xlu0 %3225 }
 0x5b6   :  { %v3231_v23 = vsel %vm3229_vm7, %v3220_v34, %v3226_v42 }
 0x5b7   :  { %v3340_v47 = vpop.permute.xlu1 %3339 }
 0x5b8   :  { %v3344_v48 = vsel %vm3341_vm5, %v3334_v32, %v3340_v47  ;;  %v3347_v45 = vsel %vm3341_vm5, %v3340_v47, %v3334_v32  ;;  %v3303_v32 = vmul.f32 %v3299_v3, %v3287_v12  ;;  %v3234_v47 = vsel %vm3229_vm7, %v3226_v42, %v3220_v34 }
 0x5b9   :  { %v3360_v51 = vmul.f32 %v3351_v38, %v3347_v45  ;;  %v3361_v54 = vmul.f32 %v3355_v43, %v3344_v48  ;;  %v3278_v5 = vpop.permute.xlu0 %3277  ;;  %v3302_v43 = vmul.f32 %v3295_v61, %v3290_v8  ;;  %v3903_v48 = vsel %vm3634_vm8, 1.0, %v5498_v30 }
 0x5ba   :  { %v3969_v38 = vpack.c.bf16 %v3303_v32, %v3301_v20  ;;  %v3641_v45 = vunpack.c.0.s8 %v3640_v1 }
 0x5bb   :  { %v3972_v35 = vpack.c.bf16 %v3360_v51, %v3358_v55  ;;  %v3284_v41 = vpop.permute.xlu1 %3283  ;;  %v3973_v53 = vpack.c.bf16 %v3361_v54, %v3359_v49  ;;  %v3233_v55 = vsel %vm3229_vm7, %v5192_v27, %v5196_v56  ;;  %v3968_v49 = vpack.c.bf16 %v3302_v43, %v3300_v22 }
 0x5bc   :  { %v3288_v52 = vsel %vm3285_vm6, %v3278_v5, %v3284_v41  ;;  %v3291_v18 = vsel %vm3285_vm6, %v3284_v41, %v3278_v5  ;;  %v3246_v51 = vmul.f32 %v3239_v11, %v3234_v47  ;;  %v3247_v54 = vmul.f32 %v3243_v36, %v3231_v23 }
 0x5bd   :  { %v3304_v29 = vmul.f32 %v3295_v61, %v3291_v18  ;;  %v3305_v16 = vmul.f32 %v3299_v3, %v3288_v52  ;;  %v5276_v19 = vpop.permute.xlu0 %3522  ;;  %3831 = vmatprep.subr.bf16.mxu0 %v3973_v53  ;;  %v3183_v61 = vrot.slane %v5214_v7, %v3182_v15  ;;  %v3187_v3 = vrot.slane %v5219_v62, %v3182_v15 }
 0x5be   :  { %3832 = vmatpush1.bf16.msra.mxu0 %v3972_v35  ;;  %v3174_v27 = vsel %vm3173_vm9, %v5202_v13, %v5242_v26  ;;  %v3637_v56 = vpack.c.bf16 %v3903_v48, %v3903_v48  ;;  %v3244_v9 = vmul.f32 %v3239_v11, %v3233_v55  ;;  %v3644_v41 = vsub.s32 %v3641_v45, %v5200_v46 }
 0x5bf   :  { %v3970_v39 = vpack.c.bf16 %v3356_v2, %v3304_v29  ;;  %v5281_v37 = vpop.permute.xlu1 %3526  ;;  %v3971_v10 = vpack.c.bf16 %v3357_v0, %v3305_v16  ;;  %v3245_v53 = vmul.f32 %v3243_v36, %v3230_v57  ;;  %v3175_v0 = vsel %vm3173_vm9, %v5204_v24, %v5238_v17 }
 0x5c0   :  { %v3177_v18 = vsel %vm3173_vm9, %v5242_v26, %v5202_v13  ;;  %v3189_v59 = vmul.f32 %v3187_v3, %v3174_v27  ;;  %v3191_v1 = vmul.f32 %v3187_v3, %v3175_v0  ;;  %v3898_v13 = vld [vmem:[%s5428_s7 + $0x10] ss:$0 sm:$0xff]  ;;  %v3899_v26 = vld [vmem:[%s5428_s7 + $0x18] ss:$0 sm:$0xff]  ;;  %v3645_v43 = vrot.slane %v3637_v56, %v3644_v41 }
 0x5c1   :  { %v5287_v28 = vpop.permute.xlu0 %3528  ;;  %3833 = vmatprep.subr.bf16.mxu0 %v3971_v10  ;;  %v3188_v10 = vmul.f32 %v3183_v61, %v3177_v18  ;;  %v3190_v15 = vmul.f32 %v3183_v61, %v3178_v25  ;;  %v3592_v23 = vsel %vm3588_vm10, %v5248_v6, %v5209_v33  ;;  %v3593_v48 = vsel %vm3588_vm10, %v5246_v31, %v5221_v44 }
 0x5c2   :  { %3834 = vmatpush1.bf16.msra.mxu0 %v3970_v39  ;;  %v3589_v45 = vsel %vm3588_vm10, %v5209_v33, %v5248_v6  ;;  %v3541_v55 = vsub.s32 7, %v5200_v46  ;;  %v3485_v56 = vsub.s32 6, %v5200_v46 }
 0x5c3   :  { %v3228_v58 = vpop.permute.xlu1 %3227  ;;  %3835 = vmatprep.subr.bf16.mxu0 %v3969_v38  ;;  %v3963_v38 = vpack.c.bf16 %v3191_v1, %v3189_v59 }
 0x5c4   :  { %v3232_v34 = vsel %vm3229_vm7, %v5250_v4, %v3228_v58  ;;  %v3235_v42 = vsel %vm3229_vm7, %v3228_v58, %v5250_v4  ;;  %v3962_v58 = vpack.c.bf16 %v3190_v15, %v3188_v10 }
 0x5c5   :  { %v3248_v5 = vmul.f32 %v3239_v11, %v3235_v42  ;;  %v3249_v60 = vmul.f32 %v3243_v36, %v3232_v34  ;;  %v3164_v30 = vpop.permute.xlu0 %3163 }
 0x5c6   :  { %3836 = vmatpush1.bf16.msra.mxu0 %v3968_v49  ;;  %v3604_v49 = vmul.f32 %v3899_v26, %v3592_v23 }
 0x5c7   :  { %v3966_v2 = vpack.c.bf16 %v3248_v5, %v3246_v51  ;;  %v3170_v35 = vpop.permute.xlu1 %3169  ;;  %v3967_v4 = vpack.c.bf16 %v3249_v60, %v3247_v54  ;;  %v3590_v51 = vsel %vm3588_vm10, %v5221_v44, %v5246_v31  ;;  %v3606_v54 = vmul.f32 %v3899_v26, %v3593_v48 }
 0x5c8   :  { %v3176_v12 = vsel %vm3173_vm9, %v3164_v30, %v3170_v35  ;;  %v3179_v52 = vsel %vm3173_vm9, %v3170_v35, %v3164_v30  ;;  %v3603_v5 = vmul.f32 %v3898_v13, %v3589_v45  ;;  %v3542_v30 = vrot.slane %v5214_v7, %v3541_v55 }
 0x5c9   :  { %v3192_v20 = vmul.f32 %v3183_v61, %v3179_v52  ;;  %v3193_v29 = vmul.f32 %v3187_v3, %v3176_v12  ;;  %v3581_v16 = vpop.permute.xlu0 %3580  ;;  %3837 = vmatprep.subr.bf16.mxu0 %v3967_v4  ;;  %v3605_v6 = vmul.f32 %v3898_v13, %v3590_v51  ;;  %v3546_v61 = vrot.slane %v5219_v62, %v3541_v55 }
 0x5ca   :  { %3838 = vmatpush1.bf16.msra.mxu0 %v3966_v2  ;;  %v3534_v3 = vsel %vm3532_vm11, %v5276_v19, %v5287_v28  ;;  %v3987_v44 = vpack.c.bf16 %v3606_v54, %v3604_v49  ;;  %v3537_v31 = vsel %vm3532_vm11, %v5287_v28, %v5276_v19  ;;  %v3486_v52 = vrot.slane %v5214_v7, %v3485_v56 }
 0x5cb   :  { %v3964_v8 = vpack.c.bf16 %v3244_v9, %v3192_v20  ;;  %v3587_v32 = vpop.permute.xlu1 %3586  ;;  %v3965_v39 = vpack.c.bf16 %v3245_v53, %v3193_v29  ;;  %v3986_v9 = vpack.c.bf16 %v3605_v6, %v3603_v5  ;;  %v3549_v35 = vmul.f32 %v3542_v30, %v3534_v3 }
 0x5cc   :  { %v3591_v22 = vsel %vm3588_vm10, %v3581_v16, %v3587_v32  ;;  %v3594_v11 = vsel %vm3588_vm10, %v3587_v32, %v3581_v16  ;;  %v3550_v46 = vmul.f32 %v3546_v61, %v3537_v31  ;;  %v3490_v20 = vrot.slane %v5219_v62, %v3485_v56 }
 0x5cd   :  { %v3607_v24 = vmul.f32 %v3898_v13, %v3591_v22  ;;  %v3608_v17 = vmul.f32 %v3899_v26, %v3594_v11  ;;  %v3521_v36 = vpop.permute.xlu0 %3520  ;;  %3839 = vmatprep.subr.bf16.mxu0 %v3965_v39  ;;  %v3904_v54 = vcombine.low %v5180_v50, %v5180_v50 }
 0x5ce   :  { %3840 = vmatpush1.bf16.msra.mxu0 %v3964_v8  ;;  %v3533_v4 = vsel %vm3532_vm11, %v3521_v36, %v5281_v37  ;;  %v3536_v28 = vsel %vm3532_vm11, %v5281_v37, %v3521_v36 }
 0x5cf   :  { %v3961_v47 = vpack.c.bf16 %v3608_v17, %v3607_v24  ;;  %v3467_v57 = vpop.permute.xlu1 %3466  ;;  %3841 = vmatprep.subr.bf16.mxu0 %v3963_v38  ;;  %v3547_v59 = vmul.f32 %v3542_v30, %v3533_v4  ;;  %v3548_v25 = vmul.f32 %v3546_v61, %v3536_v28 }
 0x5d1   :  { %v3469_v34 = vpop.permute.xlu0 %3468  ;;  %v3933_v42 = vcombine.high %v3961_v47, %v3645_v43  ;;  %v3932_v33 = vcombine.low %v3961_v47, %v3645_v43 }
 0x5d2   :  { %3842 = vmatpush1.bf16.msra.mxu0 %v3962_v58 }
 0x5d3   :  { %v3473_v60 = vpop.permute.xlu1 %3472  ;;  %3847 = vmatprep.subr.bf16.mxu0 %v3933_v42 }
 0x5d4   :  { %v3481_v1 = vsel %vm3476_vm12, %v3473_v60, %v3467_v57  ;;  %v3478_v13 = vsel %vm3476_vm12, %v3467_v57, %v3473_v60 }
 0x5d5   :  { %v3465_v27 = vpop.permute.xlu0 %3464  ;;  %v3494_v26 = vmul.f32 %v3490_v20, %v3481_v1  ;;  %v3493_v43 = vmul.f32 %v3486_v52, %v3478_v13 }
 0x5d6   :  { %3848 = vmatpush2.bf16.msra.mxu0 %v3932_v33 }
 0x5d7   :  { %v3531_v2 = vpop.permute.xlu1 %3530  ;;  %3849 = vmatprep.subr.bf16.mxu0 %v3987_v44 }
 0x5d8   :  { %v3535_v41 = vsel %vm3532_vm11, %v5253_v63, %v3531_v2  ;;  %v3538_v19 = vsel %vm3532_vm11, %v3531_v2, %v5253_v63 }
 0x5d9   :  { %v3551_v53 = vmul.f32 %v3542_v30, %v3535_v41  ;;  %v3552_v0 = vmul.f32 %v3546_v61, %v3538_v19  ;;  %v3471_v12 = vpop.permute.xlu0 %3470 }
 0x5da   :  { %v3480_v18 = vsel %vm3476_vm12, %v3471_v12, %v3465_v27  ;;  %3850 = vmatpush2.bf16.msra.mxu0 %v3986_v9  ;;  %v3477_v8 = vsel %vm3476_vm12, %v3465_v27, %v3471_v12 }
 0x5db   :  { %v3984_v29 = vpack.c.bf16 %v3551_v53, %v3549_v35  ;;  %v3475_v16 = vpop.permute.xlu1 %3474  ;;  %v3985_v63 = vpack.c.bf16 %v3552_v0, %v3550_v46  ;;  %v3492_v32 = vmul.f32 %v3490_v20, %v3480_v18  ;;  %v3491_v17 = vmul.f32 %v3486_v52, %v3477_v8 }
 0x5dc   :  { %v3479_v37 = vsel %vm3476_vm12, %v3469_v34, %v3475_v16  ;;  %v3482_v7 = vsel %vm3476_vm12, %v3475_v16, %v3469_v34 }
 0x5dd   :  { %v3495_v39 = vmul.f32 %v3486_v52, %v3479_v37  ;;  %v3496_v10 = vmul.f32 %v3490_v20, %v3482_v7  ;;  %v3411_v62 = vpop.permute.xlu0 %3410  ;;  %3851 = vmatprep.subr.bf16.mxu0 %v3985_v63  ;;  %v3981_v38 = vpack.c.bf16 %v3494_v26, %v3492_v32  ;;  %v3980_v58 = vpack.c.bf16 %v3493_v43, %v3491_v17 }
 0x5de   :  { %3852 = vmatpush2.bf16.msra.mxu0 %v3984_v29 }
 0x5df   :  { %v3982_v22 = vpack.c.bf16 %v3547_v59, %v3495_v39  ;;  %v3413_v11 = vpop.permute.xlu1 %3412  ;;  %v3983_v24 = vpack.c.bf16 %v3548_v25, %v3496_v10 }
 0x5e1   :  { %v3417_v36 = vpop.permute.xlu0 %3416  ;;  %3853 = vmatprep.subr.bf16.mxu0 %v3983_v24 }
 0x5e2   :  { %v3422_v15 = vsel %vm3420_vm4, %v3411_v62, %v3417_v36  ;;  %v3425_v23 = vsel %vm3420_vm4, %v3417_v36, %v3411_v62  ;;  %3854 = vmatpush2.bf16.msra.mxu0 %v3982_v22 }
 0x5e3   :  { %v3419_v47 = vpop.permute.xlu1 %3418  ;;  %3855 = vmatprep.subr.bf16.mxu0 %v3981_v38  ;;  %v3437_v45 = vmul.f32 %v5225_v21, %v3422_v15  ;;  %v3438_v55 = vmul.f32 %v5228_v14, %v3425_v23 }
 0x5e4   :  { %v3423_v57 = vsel %vm3420_vm4, %v3413_v11, %v3419_v47  ;;  %v3426_v48 = vsel %vm3420_vm4, %v3419_v47, %v3413_v11 }
 0x5e5   :  { %v3439_v49 = vmul.f32 %v5225_v21, %v3423_v57  ;;  %v3440_v34 = vmul.f32 %v5228_v14, %v3426_v48 }
 0x5e6   :  { %3856 = vmatpush2.bf16.msra.mxu0 %v3980_v58 }
 0x5e7   :  { %v3978_v42 = vpack.c.bf16 %v3439_v49, %v3437_v45  ;;  %v3979_v51 = vpack.c.bf16 %v3440_v34, %v3438_v55 }
 0x5e9   :  { %3857 = vmatprep.subr.bf16.mxu0 %v3979_v51 }
 0x5ea   :  { %3858 = vmatpush2.bf16.msra.mxu0 %v3978_v42 }
 0x5ed   :  { %3860 = vmatmul.mubr.bf16.vlgmr.msra.gmra.mxu0 %v3904_v54 }
 0x6ad   :  { %v3861_v5 = vpop.f32.mrf.mxu0 }
 0x6ae   :  { %3868 = vst [vmem:[%s5429_s9] sm:$0xff] %v3861_v5 }
 0x6af   :  { %v3863_v40 = vpop.f32.mrf.mxu0 }
 0x6b0   :  { %3869 = vst [vmem:[%s5429_s9 + $0x8] sm:$0xff] %v3863_v40 }
 0x6b1   :  { %v3865_v21 = vpop.f32.mrf.mxu0 }
 0x6b3   :  { %v3866_v14 = vpop.f32.mrf.mxu0 }

</bundles_post_ra>
